<compile_context>
chip_gen: v5e
topology: v5e:2x2
jax: 0.10.0
libtpu: 0.0.40
codegen_flags: <defaults>
</compile_context>

<pallas_src>
import jax
import jax.numpy as jnp
from jax import lax
from jax.experimental import pallas as pl
from jax.experimental.pallas import tpu as pltpu

# ----------------------------- problem sizes ---------------------------------
B = 2                 # batch
FEATURES = 32         # channels
H = W = 16            # spatial
HW = H * W
M = 2                 # number of SK branches (kernel sizes 3, 5)
G = 4                 # conv groups
R = 2                 # reduction ratio
L = 32
D = max(FEATURES // R, L)      # = 32
STRIDE = 1
KMAX = 3 + 2 * (M - 1)         # 5  (all branch kernels zero-padded to KMAX)
PMAX = 1 + (M - 1)             # 2  (all branches share padding PMAX)
BN_EPS = 1e-5
KIM = KMAX * KMAX * FEATURES                 # 800 im2col contraction size
KPAD = ((KIM + 127) // 128) * 128            # 896 lane-aligned contraction size
MC = M * FEATURES                            # 64  branches-on-lanes conv output
MCPAD = ((MC + 127) // 128) * 128            # 128 lane-aligned conv output dim


# ------------------------------ Pallas kernel ---------------------------------
def _sknet_fused_kernel(patch_ref, w_ref, scale_ref, bias_ref,
                        wfc_ref, bfc_ref, w2_ref, b2_ref,
                        att_ref, feaf_ref):
    """Per-batch fused SK block (one grid program per batch element).

    patch_ref: [HW, KPAD]      bf16 im2col patches for this batch (zero-padded K)
    w_ref:     [KPAD, MCPAD]   bf16 block-diag grouped conv weights, branches+pad on N
    scale_ref: [1, MCPAD]      f32 folded BN scale (zeros on padded lanes)
    bias_ref:  [1, MCPAD]      f32 folded BN bias incl. conv bias (zeros on pad)
    wfc_ref:   [MCPAD, D]      f32 fc weight tiled over branches (folds branch sum)
    bfc_ref:   [1, D]          f32
    w2_ref:    [MCPAD, M*C]    f32 fc∘fcs composed weights (tail independent of fea_f)
    b2_ref:    [1, M*C]        f32 composed bias
    att_ref:   [1, 1, C]       f32 sum_j softmax_j(attention)   (output)
    feaf_ref:  [1, 1, D]       f32 fea_f                        (output)
    """
    C = FEATURES

    # (1) both grouped convs as one wide-K MXU matmul (bf16 in, f32 accumulate)
    z = jnp.dot(patch_ref[...], w_ref[...],
                preferred_element_type=jnp.float32)              # [HW, MCPAD]

    # (2) folded BatchNorm (eval) + conv bias + ReLU, f32 VPU math (pad lanes -> 0)
    z = jnp.maximum(z * scale_ref[...] + bias_ref[...], 0.0)

    # (3) spatial mean for this batch element
    fea_mc = jnp.mean(z, axis=0, keepdims=True)                  # [1, MCPAD]

    # (4) fc; branch sum folded into the tiled (and zero-padded) fc weight
    fea_f = jnp.dot(fea_mc, wfc_ref[...],
                    preferred_element_type=jnp.float32) + bfc_ref[...]   # [1, D]

    # (5) both fcs in ONE dot, pre-composed through the fc weight so it does not
    #     wait on fea_f (shorter serial MXU tail)
    v_all = jnp.dot(fea_mc, w2_ref[...],
                    preferred_element_type=jnp.float32) + b2_ref[...]    # [1, M*C]

    # softmax over the branch axis, then branch-sum (matches the literal reference
    # combine; mathematically ~1.0, kept for fidelity) -- EUP exp + EUP reciprocal
    vs = [v_all[:, j * C:(j + 1) * C] for j in range(M)]
    vmax = vs[0]
    for j in range(1, M):
        vmax = jnp.maximum(vmax, vs[j])
    es = [jnp.exp(v - vmax) for v in vs]
    denom = es[0]
    for j in range(1, M):
        denom = denom + es[j]
    inv = pl.reciprocal(denom, approx=True)
    att_sum = es[0] * inv
    for j in range(1, M):
        att_sum = att_sum + es[j] * inv                          # [1, C]

    att_ref[...] = att_sum.reshape(1, 1, C)
    feaf_ref[...] = fea_f.reshape(1, 1, D)


# ------------------------------- wrapper --------------------------------------
@jax.jit
def sknet_forward(x_nchw, w_im2col, scale, bias, wfc_tiled, bfc2, w2, b2):
    C = FEATURES
    # cast to bf16 BEFORE building the 25 taps -> half the wrapper HBM traffic
    x = jnp.transpose(x_nchw, (0, 2, 3, 1)).astype(jnp.bfloat16)   # NCHW -> NHWC bf16
    x_pad = jnp.pad(x, ((0, 0), (PMAX, PMAX), (PMAX, PMAX), (0, 0)))

    # im2col patch matrix [B*H*W, KMAX*KMAX*C], lane-padded K with exact zeros.
    taps = [x_pad[:, kh:kh + H, kw:kw + W, :]
            for kh in range(KMAX) for kw in range(KMAX)]
    patch = jnp.stack(taps, axis=3).reshape(B * HW, KIM)
    patch = jnp.pad(patch, ((0, 0), (0, KPAD - KIM)))              # bf16 [B*HW, KPAD]

    cost = pl.CostEstimate(
        flops=2 * B * HW * KPAD * MCPAD + 2 * B * MCPAD * (D + MC),
        transcendentals=B * MC,
        bytes_accessed=(B * HW * KPAD + KPAD * MCPAD) * 2
        + (2 * MCPAD + MCPAD * D + D + MCPAD * MC + MC + B * (C + D)) * 4)

    att3, feaf3 = pl.pallas_call(
        _sknet_fused_kernel,
        out_shape=(jax.ShapeDtypeStruct((B, 1, C), jnp.float32),
                   jax.ShapeDtypeStruct((B, 1, D), jnp.float32)),
        grid_spec=pltpu.PrefetchScalarGridSpec(
            num_scalar_prefetch=0,
            grid=(B,),
            in_specs=[
                pl.BlockSpec((HW, KPAD), lambda b: (b, 0)),        # per-batch patch
                pl.BlockSpec((KPAD, MCPAD), lambda b: (0, 0)),     # resident weights
                pl.BlockSpec((1, MCPAD), lambda b: (0, 0)),
                pl.BlockSpec((1, MCPAD), lambda b: (0, 0)),
                pl.BlockSpec((MCPAD, D), lambda b: (0, 0)),
                pl.BlockSpec((1, D), lambda b: (0, 0)),
                pl.BlockSpec((MCPAD, MC), lambda b: (0, 0)),
                pl.BlockSpec((1, MC), lambda b: (0, 0)),
            ],
            out_specs=[
                pl.BlockSpec((1, 1, C), lambda b: (b, 0, 0)),
                pl.BlockSpec((1, 1, D), lambda b: (b, 0, 0)),
            ]),
        compiler_params=pltpu.CompilerParams(
            dimension_semantics=("parallel",)),
        cost_estimate=cost,
    )(patch, w_im2col, scale, bias, wfc_tiled, bfc2, w2, b2)

    att_sum = att3[:, 0, :]                                        # [B, C]
    fea_f = feaf3[:, 0, :]                                         # [B, D]
    # literal reference combine: (att[B,M,C,1,1] * fea_f[B,D]).sum(dim=1) -> [B,C,B,D]
    # (pure broadcast expansion of the kernel's tiny outputs; done by XLA)
    return att_sum[:, :, None, None] * fea_f[None, None, :, :]


# -------------------------- deterministic parameters ---------------------------
def init_params(key):
    C = FEATURES
    Cg = C // G
    conv_w, conv_b, gamma, beta, rmean, rvar = [], [], [], [], [], []
    for i in range(M):
        k = 3 + 2 * i
        key, k1, k2, k3, k4, k5, k6 = jax.random.split(key, 7)
        conv_w.append(0.1 * jax.random.normal(k1, (C, Cg, k, k), jnp.float32))
        conv_b.append(0.1 * jax.random.normal(k2, (C,), jnp.float32))
        gamma.append(1.0 + 0.1 * jax.random.normal(k3, (C,), jnp.float32))
        beta.append(0.1 * jax.random.normal(k4, (C,), jnp.float32))
        rmean.append(0.1 * jax.random.normal(k5, (C,), jnp.float32))
        rvar.append(0.5 + jax.random.uniform(k6, (C,), jnp.float32))
    key, k1, k2, k3, k4 = jax.random.split(key, 5)
    wfc = 0.1 * jax.random.normal(k1, (D, C), jnp.float32)      # Linear(features, d)
    bfc = 0.1 * jax.random.normal(k2, (D,), jnp.float32)
    wfcs = 0.1 * jax.random.normal(k3, (M, C, D), jnp.float32)  # M x Linear(d, features)
    bfcs = 0.1 * jax.random.normal(k4, (M, C), jnp.float32)
    return dict(conv_w=conv_w, conv_b=conv_b, gamma=gamma, beta=beta,
                rmean=rmean, rvar=rvar, wfc=wfc, bfc=bfc, wfcs=wfcs, bfcs=bfcs)


def pack_params(params):
    """Pack grouped-conv weights (block-diag, zero-padded to KMAX taps and to
    MCPAD output lanes) for im2col with branches along the output dim, plus
    folded BN scale/bias, the branch-summing tiled fc weight, and the composed
    fc∘fcs tail weights."""
    C = FEATURES
    Cg = C // G
    w_full = jnp.zeros((M, KMAX, KMAX, C, C), jnp.float32)
    scale = jnp.zeros((M, C), jnp.float32)
    bias = jnp.zeros((M, C), jnp.float32)
    for i in range(M):
        k = 3 + 2 * i
        off = (KMAX - k) // 2
        wt = jnp.transpose(params['conv_w'][i], (2, 3, 1, 0))   # [k, k, Cg, C_out]
        blk = jnp.zeros((k, k, C, C), jnp.float32)
        for g in range(G):
            blk = blk.at[:, :, g * Cg:(g + 1) * Cg, g * Cg:(g + 1) * Cg].set(
                wt[:, :, :, g * Cg:(g + 1) * Cg])
        w_full = w_full.at[i, off:off + k, off:off + k].set(blk)
        s = params['gamma'][i] / jnp.sqrt(params['rvar'][i] + BN_EPS)
        scale = scale.at[i].set(s)
        bias = bias.at[i].set(
            params['beta'][i] + s * (params['conv_b'][i] - params['rmean'][i]))

    # [M, KMAX, KMAX, Cin, Cout] -> rows (kh, kw, cin), cols (m, cout); pad to lanes
    w_im2col = jnp.transpose(w_full, (1, 2, 3, 0, 4)).reshape(KIM, MC)
    w_im2col = jnp.pad(w_im2col, ((0, KPAD - KIM), (0, MCPAD - MC))).astype(jnp.bfloat16)

    scale2 = jnp.pad(scale.reshape(1, MC), ((0, 0), (0, MCPAD - MC)))   # [1, MCPAD]
    bias2 = jnp.pad(bias.reshape(1, MC), ((0, 0), (0, MCPAD - MC)))     # [1, MCPAD]

    # tile fc weight over branches so the branch sum folds into one matmul; pad rows
    wfc_tiled = jnp.pad(jnp.tile(params['wfc'].T, (M, 1)),
                        ((0, MCPAD - MC), (0, 0)))                      # [MCPAD, D]
    bfc2 = params['bfc'][None, :]                                       # [1, D]

    # compose the M fcs through the fc so the attention logits depend only on fea_mc
    wfcs_concat = jnp.concatenate(
        [params['wfcs'][j].T for j in range(M)], axis=1)                # [D, M*C]
    w2 = wfc_tiled @ wfcs_concat                                        # [MCPAD, M*C]
    b2 = bfc2 @ wfcs_concat + params['bfcs'].reshape(1, MC)             # [1, M*C]
    return w_im2col, scale2, bias2, wfc_tiled, bfc2, w2, b2


# ------------------------------ pure-JAX reference ------------------------------
def reference_forward(x_nchw, params):
    feas_sum = 0.0
    for i in range(M):
        p = 1 + i
        y = lax.conv_general_dilated(
            x_nchw, params['conv_w'][i],
            window_strides=(STRIDE, STRIDE),
            padding=[(p, p), (p, p)],
            dimension_numbers=('NCHW', 'OIHW', 'NCHW'),
            feature_group_count=G)
        y = y + params['conv_b'][i][None, :, None, None]
        s = params['gamma'][i] / jnp.sqrt(params['rvar'][i] + BN_EPS)
        y = s[None, :, None, None] * (y - params['rmean'][i][None, :, None, None]) \
            + params['beta'][i][None, :, None, None]
        y = jnp.maximum(y, 0.0)
        feas_sum = feas_sum + y
    fea_s = feas_sum.mean(axis=(2, 3))                            # [B, C]
    fea_f = fea_s @ params['wfc'].T + params['bfc']               # [B, D]
    vs = [fea_f @ params['wfcs'][j].T + params['bfcs'][j] for j in range(M)]
    att = jax.nn.softmax(jnp.stack(vs, axis=1), axis=1)           # [B, M, C]
    att5 = att[:, :, :, None, None]                               # [B, M, C, 1, 1]
    # literal reference line: (attention_vectors * fea_f).sum(dim=1) -> [B, C, B, D]
    return (att5 * fea_f).sum(axis=1)


# ------------------------------------ main --------------------------------------
if __name__ == "__main__":
    key = jax.random.PRNGKey(0)
    kx, kp = jax.random.split(key)
    x = jax.random.normal(kx, (B, FEATURES, H, W), jnp.float32)   # NCHW, like PyTorch
    params = init_params(kp)

    packed = pack_params(params)
    out = sknet_forward(x, *packed)
    out = jax.block_until_ready(out)

    ref = reference_forward(x, params)
    assert out.shape == (B, FEATURES, B, D), out.shape
    if not jnp.allclose(out, ref, rtol=2e-2, atol=2e-2):
        raise AssertionError(
            f"kernel/reference mismatch, max abs err = {float(jnp.max(jnp.abs(out - ref)))}")

    print("KERNEL_OK")
</pallas_src>

<mosaic_0001>
module attributes {stable_mosaic.version = 11 : i64} {
  func.func @_sknet_fused_kernel(%arg0: i32, %arg1: memref<256x896xbf16, #tpu.memory_space<vmem>>, %arg2: memref<896x128xbf16, #tpu.memory_space<vmem>>, %arg3: memref<1x128xf32, #tpu.memory_space<vmem>>, %arg4: memref<1x128xf32, #tpu.memory_space<vmem>>, %arg5: memref<128x32xf32, #tpu.memory_space<vmem>>, %arg6: memref<1x32xf32, #tpu.memory_space<vmem>>, %arg7: memref<128x64xf32, #tpu.memory_space<vmem>>, %arg8: memref<1x64xf32, #tpu.memory_space<vmem>>, %arg9: memref<1x1x32xf32, #tpu.memory_space<vmem>>, %arg10: memref<1x1x32xf32, #tpu.memory_space<vmem>>) attributes {dimension_semantics = [#tpu.dimension_semantics<parallel>], iteration_bounds = array<i64: 2>, scalar_prefetch = 0 : i64, scratch_operands = 0 : i64, tpu.core_type = #tpu.core_type<tc>, window_params = [{transform_indices = @transform_0, window_bounds = array<i64: 256, 896>}, {pipeline_mode = #tpu.pipeline_mode<synchronous>, transform_indices = @transform_1, window_bounds = array<i64: 896, 128>}, {pipeline_mode = #tpu.pipeline_mode<synchronous>, transform_indices = @transform_2, window_bounds = array<i64: 1, 128>}, {pipeline_mode = #tpu.pipeline_mode<synchronous>, transform_indices = @transform_3, window_bounds = array<i64: 1, 128>}, {pipeline_mode = #tpu.pipeline_mode<synchronous>, transform_indices = @transform_4, window_bounds = array<i64: 128, 32>}, {pipeline_mode = #tpu.pipeline_mode<synchronous>, transform_indices = @transform_5, window_bounds = array<i64: 1, 32>}, {pipeline_mode = #tpu.pipeline_mode<synchronous>, transform_indices = @transform_6, window_bounds = array<i64: 128, 64>}, {pipeline_mode = #tpu.pipeline_mode<synchronous>, transform_indices = @transform_7, window_bounds = array<i64: 1, 64>}, {transform_indices = @transform_8, window_bounds = array<i64: 1, 1, 32>}, {transform_indices = @transform_9, window_bounds = array<i64: 1, 1, 32>}]} {
    %c0 = arith.constant 0 : index
    %c0_0 = arith.constant 0 : index
    %0 = vector.load %arg1[%c0, %c0_0] : memref<256x896xbf16, #tpu.memory_space<vmem>>, vector<256x896xbf16>
    %c0_1 = arith.constant 0 : index
    %c0_2 = arith.constant 0 : index
    %1 = vector.load %arg2[%c0_1, %c0_2] : memref<896x128xbf16, #tpu.memory_space<vmem>>, vector<896x128xbf16>
    %cst = arith.constant dense<0.000000e+00> : vector<256x128xf32>
    %2 = tpu.matmul %0, %1, %cst {dimension_numbers = #tpu.dot_dimension_numbers<[1], [0], [0], [1], [0, 0, 1, 1], [], []>} : vector<256x896xbf16>, vector<896x128xbf16>, vector<256x128xf32> -> vector<256x128xf32>
    %c0_3 = arith.constant 0 : index
    %c0_4 = arith.constant 0 : index
    %3 = vector.load %arg3[%c0_3, %c0_4] : memref<1x128xf32, #tpu.memory_space<vmem>>, vector<1x128xf32>
    %4 = vector.broadcast %3 : vector<1x128xf32> to vector<256x128xf32>
    %5 = arith.mulf %2, %4 : vector<256x128xf32>
    %c0_5 = arith.constant 0 : index
    %c0_6 = arith.constant 0 : index
    %6 = vector.load %arg4[%c0_5, %c0_6] : memref<1x128xf32, #tpu.memory_space<vmem>>, vector<1x128xf32>
    %7 = vector.broadcast %6 : vector<1x128xf32> to vector<256x128xf32>
    %8 = arith.addf %5, %7 : vector<256x128xf32>
    %cst_7 = arith.constant 0.000000e+00 : f32
    %9 = vector.broadcast %cst_7 : f32 to vector<256x128xf32>
    %10 = arith.maximumf %8, %9 : vector<256x128xf32>
    %cst_8 = arith.constant dense<0.000000e+00> : vector<128xf32>
    %11 = vector.multi_reduction <add>, %10, %cst_8 [0] : vector<256x128xf32> to vector<128xf32>
    %12 = vector.shape_cast %11 : vector<128xf32> to vector<1x128xf32>
    %cst_9 = arith.constant 2.560000e+02 : f32
    %13 = vector.broadcast %cst_9 : f32 to vector<1x128xf32>
    %14 = arith.divf %12, %13 : vector<1x128xf32>
    %c0_10 = arith.constant 0 : index
    %c0_11 = arith.constant 0 : index
    %15 = vector.load %arg5[%c0_10, %c0_11] : memref<128x32xf32, #tpu.memory_space<vmem>>, vector<128x32xf32>
    %cst_12 = arith.constant dense<0.000000e+00> : vector<1x32xf32>
    %16 = tpu.matmul %14, %15, %cst_12 {dimension_numbers = #tpu.dot_dimension_numbers<[1], [0], [0], [1], [0, 0, 1, 1], [], []>} : vector<1x128xf32>, vector<128x32xf32>, vector<1x32xf32> -> vector<1x32xf32>
    %c0_13 = arith.constant 0 : index
    %c0_14 = arith.constant 0 : index
    %17 = vector.load %arg6[%c0_13, %c0_14] : memref<1x32xf32, #tpu.memory_space<vmem>>, vector<1x32xf32>
    %18 = arith.addf %16, %17 : vector<1x32xf32>
    %c0_15 = arith.constant 0 : index
    %c0_16 = arith.constant 0 : index
    %19 = vector.load %arg7[%c0_15, %c0_16] : memref<128x64xf32, #tpu.memory_space<vmem>>, vector<128x64xf32>
    %cst_17 = arith.constant dense<0.000000e+00> : vector<1x64xf32>
    %20 = tpu.matmul %14, %19, %cst_17 {dimension_numbers = #tpu.dot_dimension_numbers<[1], [0], [0], [1], [0, 0, 1, 1], [], []>} : vector<1x128xf32>, vector<128x64xf32>, vector<1x64xf32> -> vector<1x64xf32>
    %c0_18 = arith.constant 0 : index
    %c0_19 = arith.constant 0 : index
    %21 = vector.load %arg8[%c0_18, %c0_19] : memref<1x64xf32, #tpu.memory_space<vmem>>, vector<1x64xf32>
    %22 = arith.addf %20, %21 : vector<1x64xf32>
    %23 = vector.extract_strided_slice %22 {offsets = [0, 0], sizes = [1, 32], strides = [1, 1]} : vector<1x64xf32> to vector<1x32xf32>
    %24 = vector.extract_strided_slice %22 {offsets = [0, 32], sizes = [1, 32], strides = [1, 1]} : vector<1x64xf32> to vector<1x32xf32>
    %25 = arith.maximumf %23, %24 : vector<1x32xf32>
    %26 = arith.subf %23, %25 : vector<1x32xf32>
    %27 = math.exp %26 : vector<1x32xf32>
    %28 = arith.subf %24, %25 : vector<1x32xf32>
    %29 = math.exp %28 : vector<1x32xf32>
    %30 = arith.addf %27, %29 : vector<1x32xf32>
    %31 = tpu.reciprocal %30 {approx = true} : vector<1x32xf32> -> vector<1x32xf32>
    %32 = arith.mulf %27, %31 : vector<1x32xf32>
    %33 = arith.mulf %29, %31 : vector<1x32xf32>
    %34 = arith.addf %32, %33 : vector<1x32xf32>
    %35 = vector.shape_cast %34 : vector<1x32xf32> to vector<1x1x32xf32>
    %c0_20 = arith.constant 0 : index
    %c0_21 = arith.constant 0 : index
    %c0_22 = arith.constant 0 : index
    %36 = vector.load %arg9[%c0_20, %c0_21, %c0_22] : memref<1x1x32xf32, #tpu.memory_space<vmem>>, vector<1x1x32xf32>
    tpu.vector_store %arg9[%c0_20, %c0_21, %c0_22], %35 {strides = array<i32>} : memref<1x1x32xf32, #tpu.memory_space<vmem>>, vector<1x1x32xf32>,
    %37 = vector.shape_cast %18 : vector<1x32xf32> to vector<1x1x32xf32>
    %c0_23 = arith.constant 0 : index
    %c0_24 = arith.constant 0 : index
    %c0_25 = arith.constant 0 : index
    %38 = vector.load %arg10[%c0_23, %c0_24, %c0_25] : memref<1x1x32xf32, #tpu.memory_space<vmem>>, vector<1x1x32xf32>
    tpu.vector_store %arg10[%c0_23, %c0_24, %c0_25], %37 {strides = array<i32>} : memref<1x1x32xf32, #tpu.memory_space<vmem>>, vector<1x1x32xf32>,
    return
  }
  func.func @transform_0(%arg0: i32) -> (i32, i32) {
    %c0_i32 = arith.constant 0 : i32
    %c0_i32_0 = arith.constant 0 : i32
    return %arg0, %c0_i32 : i32, i32
  }
  func.func @transform_1(%arg0: i32) -> (i32, i32) {
    %c0_i32 = arith.constant 0 : i32
    %c0_i32_0 = arith.constant 0 : i32
    %c0_i32_1 = arith.constant 0 : i32
    return %c0_i32, %c0_i32_0 : i32, i32
  }
  func.func @transform_2(%arg0: i32) -> (i32, i32) {
    %c0_i32 = arith.constant 0 : i32
    %c0_i32_0 = arith.constant 0 : i32
    %c0_i32_1 = arith.constant 0 : i32
    return %c0_i32, %c0_i32_0 : i32, i32
  }
  func.func @transform_3(%arg0: i32) -> (i32, i32) {
    %c0_i32 = arith.constant 0 : i32
    %c0_i32_0 = arith.constant 0 : i32
    %c0_i32_1 = arith.constant 0 : i32
    return %c0_i32, %c0_i32_0 : i32, i32
  }
  func.func @transform_4(%arg0: i32) -> (i32, i32) {
    %c0_i32 = arith.constant 0 : i32
    %c0_i32_0 = arith.constant 0 : i32
    %c0_i32_1 = arith.constant 0 : i32
    return %c0_i32, %c0_i32_0 : i32, i32
  }
  func.func @transform_5(%arg0: i32) -> (i32, i32) {
    %c0_i32 = arith.constant 0 : i32
    %c0_i32_0 = arith.constant 0 : i32
    %c0_i32_1 = arith.constant 0 : i32
    return %c0_i32, %c0_i32_0 : i32, i32
  }
  func.func @transform_6(%arg0: i32) -> (i32, i32) {
    %c0_i32 = arith.constant 0 : i32
    %c0_i32_0 = arith.constant 0 : i32
    %c0_i32_1 = arith.constant 0 : i32
    return %c0_i32, %c0_i32_0 : i32, i32
  }
  func.func @transform_7(%arg0: i32) -> (i32, i32) {
    %c0_i32 = arith.constant 0 : i32
    %c0_i32_0 = arith.constant 0 : i32
    %c0_i32_1 = arith.constant 0 : i32
    return %c0_i32, %c0_i32_0 : i32, i32
  }
  func.func @transform_8(%arg0: i32) -> (i32, i32, i32) {
    %c0_i32 = arith.constant 0 : i32
    %c0_i32_0 = arith.constant 0 : i32
    %c0_i32_1 = arith.constant 0 : i32
    return %arg0, %c0_i32, %c0_i32_0 : i32, i32, i32
  }
  func.func @transform_9(%arg0: i32) -> (i32, i32, i32) {
    %c0_i32 = arith.constant 0 : i32
    %c0_i32_0 = arith.constant 0 : i32
    %c0_i32_1 = arith.constant 0 : i32
    return %arg0, %c0_i32, %c0_i32_0 : i32, i32, i32
  }
}

</mosaic_0001>

<bundles_post_ra>
// kernel: sknet_forward.1
= control target key start
LH: loop header
LB: loop body
LE: loop exit
PB: predicated region body
PF: predicated region fallthrough
CT: control target
= control target key end

     0   :  { %s3405_s30 = smov 0   ;;  %s4267_s0 = inlined_call_operand.vmem [shape: bf16[512,896], index: 0, kind: input, shape index: {}]   ;;  %s4268_s1 = inlined_call_operand.vmem [shape: bf16[896,128], index: 1, kind: input, shape index: {}]   ;;  %s4269_s2 = inlined_call_operand.vmem [shape: f32[1,128], index: 2, kind: input, shape index: {}]   ;;  %s4270_s3 = inlined_call_operand.vmem [shape: f32[1,128], index: 3, kind: input, shape index: {}]   ;;  %s4271_s4 = inlined_call_operand.vmem [shape: f32[128,32], index: 4, kind: input, shape index: {}]   ;;  %s4272_s5 = inlined_call_operand.vmem [shape: f32[1,32], index: 5, kind: input, shape index: {}]   ;;  %s4273_s6 = inlined_call_operand.vmem [shape: f32[128,64], index: 6, kind: input, shape index: {}]   ;;  %s4274_s7 = inlined_call_operand.vmem [shape: f32[1,64], index: 7, kind: input, shape index: {}]   ;;  %s4275_s8 = inlined_call_operand.vmem [shape: f32[2,1,32], index: 8, kind: output, shape index: {0}]   ;;  %s4276_s9 = inlined_call_operand.vmem [shape: f32[2,1,32], index: 9, kind: output, shape index: {1}]  }
   0x1 LB: > { %s3411_s10 = sadd.s32 4294967295, %s3350_s30   ;;  %p2452_p0 = scmp.ge.s32.totalorder %s3350_s30, 1  ;;  %s3350_s30 = sphi %s3405_s30, %s20_s30  }
   0x2   : > { %p292_p1 = scmp.lt.s32.totalorder %s3350_s30, 3 }
   0x4   : > { %p293_p2 = pnand %p2452_p0, %p292_p1 }
   0x5   : > { %s2453_s29 = sshll.u32 (!%p293_p2), %s3411_s10, 5  ;;  %p337_p4 = scmp.lt.s32.totalorder (!%p293_p2), %s3411_s10, 1 }
   0x6   : > { %296 = sbr.rel (%p293_p2) target bundleno = 1377 (0x561), region = 52  ;;  %p331_p3 = scmp.lt.s32.totalorder (!%p293_p2), %s2453_s29, 63 }
   0x7   : > { %s3354_s20 = smov (!%p293_p2), 32  }
   0xb   : > { %v3248_v0 = vld [vmem:[%s4268_s1 + $0x38] sm:$0xff]  ;;  %v3247_v3 = vld [vmem:[%s4268_s1 + $0x30] sm:$0xff]  ;;  %v3246_v6 = vld [vmem:[%s4268_s1 + $0x28] sm:$0xff]  ;;  %s4278_s29 = smov (!%p331_p3, %s2453_s29), 63  ;;  %s4280_s10 = smov (!%p337_p4, %s3411_s10), 1  ;;  %vm2373_vm1 = vcmask 253952  }
   0xc   : > { %v3421_v1 = vld [vmem:[%s4268_s1 + $0x78] sm:$0xff]  ;;  %1495 = vmatpush.bf16.msra.mxu0 %v3248_v0  ;;  %3297 = vmatpush.bf16.msra.mxu3 %v3248_v0  ;;  %v3436_v4 = vld [vmem:[%s4268_s1 + $0x70] sm:$0xff]  ;;  %v3451_v7 = vld [vmem:[%s4268_s1 + $0x68] sm:$0xff]  ;;  %s3321_s25 = smul.u32 28, %s4278_s29  ;;  %s342_s17 = scalar_lea.vmem %s4276_s9, %s4280_s10 }
   0xd   : > { %v3426_v2 = vld [vmem:[%s4268_s1 + $0xb8] sm:$0xff]  ;;  %1584 = vmatpush.bf16.msra.mxu1 %v3421_v1  ;;  %v3441_v5 = vld [vmem:[%s4268_s1 + $0xb0] sm:$0xff]  ;;  %v3456_v8 = vld [vmem:[%s4268_s1 + $0xa8] sm:$0xff]  ;;  %s339_s23 = scalar_lea.vmem %s4275_s8, %s4280_s10 }
   0xe   : > { %1673 = vmatpush.bf16.msra.mxu2 %v3426_v2  ;;  %v3245_v9 = vld [vmem:[%s4268_s1 + $0x20] sm:$0xff]  ;;  %v3244_v12 = vld [vmem:[%s4268_s1 + $0x18] sm:$0xff]  ;;  %v3243_v15 = vld [vmem:[%s4268_s1 + $0x10] sm:$0xff]  ;;  %s3510_s15 = scalar_lea.vmem %s4267_s0, %s3321_s25 }
   0xf   : > { %v3467_v10 = vld [vmem:[%s4268_s1 + $0x60] sm:$0xff]  ;;  %v3482_v13 = vld [vmem:[%s4268_s1 + $0x58] sm:$0xff]  ;;  %v3497_v16 = vld [vmem:[%s4268_s1 + $0x50] sm:$0xff] }
  0x10   : > { %1496 = vmatpush.bf16.msra.mxu0 %v3247_v3  ;;  %3298 = vmatpush.bf16.msra.mxu3 %v3247_v3  ;;  %v3472_v11 = vld [vmem:[%s4268_s1 + $0xa0] sm:$0xff]  ;;  %v3487_v14 = vld [vmem:[%s4268_s1 + $0x98] sm:$0xff]  ;;  %v3502_v17 = vld [vmem:[%s4268_s1 + $0x90] sm:$0xff] }
  0x11   : > { %1585 = vmatpush.bf16.msra.mxu1 %v3436_v4  ;;  %v3242_v18 = vld [vmem:[%s4268_s1 + $0x8] sm:$0xff]  ;;  %v3241_v21 = vld [vmem:[%s4268_s1] sm:$0xff]  ;;  %v3132_v25 = vld [vmem:[%s3510_s15 + $0x18] sm:$0xf0] }
  0x12   : > { %1674 = vmatpush.bf16.msra.mxu2 %v3441_v5  ;;  %v3517_v19 = vld [vmem:[%s4268_s1 + $0x48] sm:$0xff]  ;;  %v3530_v22 = vld [vmem:[%s4268_s1 + $0x40] sm:$0xff]  ;;  %v2821_v26 = vld [vmem:[%s3510_s15 + $0x2d8] sm:$0xf] }
  0x13   : > { %v3522_v20 = vld [vmem:[%s4268_s1 + $0x88] sm:$0xff]  ;;  %v3535_v23 = vld [vmem:[%s4268_s1 + $0x80] sm:$0xff]  ;;  %v3223_v27 = vld [vmem:[%s3510_s15 + $0x2f0] sm:$0xf0] }
  0x14   : > { %1497 = vmatpush.bf16.msra.mxu0 %v3246_v6  ;;  %3299 = vmatpush.bf16.msra.mxu3 %v3246_v6  ;;  %v2457_v24 = vld [vmem:[%s3510_s15] sm:$0xf]  ;;  %v3129_v28 = vld [vmem:[%s3510_s15 + $0x4] sm:$0xf]  ;;  %v2465_v30 = vld [vmem:[%s3510_s15 + $0x8] sm:$0xf]  ;;  %v2822_v35 = vor.u32 %v3223_v27, %v2821_v26 }
  0x15   : > { %1586 = vmatpush.bf16.msra.mxu1 %v3451_v7  ;;  %v2459_v29 = vld [vmem:[%s3510_s15 + $0x1c] sm:$0xf0]  ;;  %v3133_v31 = vld [vmem:[%s3510_s15 + $0x20] sm:$0xf0]  ;;  %v3296_v32 = vld [vmem:[%s4268_s1 + $0x1b8] sm:$0xff]  ;;  %v2458_v34 = vor.u32 %v3132_v25, %v2457_v24 }
  0x16   : > { %1675 = vmatpush.bf16.msra.mxu2 %v3456_v8  ;;  %v3280_v33 = vld [vmem:[%s4268_s1 + $0x138] sm:$0xff]  ;;  %v2462_v36 = vor.u32 %v3129_v28, %v2459_v29  ;;  %v2466_v37 = vor.u32 %v3133_v31, %v2465_v30  ;;  %v3295_v39 = vld [vmem:[%s4268_s1 + $0x1b0] sm:$0xff]  ;;  %v3230_v45 = vld [vmem:[%s3510_s15 + $0x328] sm:$0xf0] }
  0x17   : > { %v3288_v38 = vld [vmem:[%s4268_s1 + $0x178] sm:$0xff]  ;;  %v3279_v40 = vld [vmem:[%s4268_s1 + $0x130] sm:$0xff]  ;;  %v2493_v48 = vld [vmem:[%s3510_s15 + $0x40] sm:$0xf] }
  0x18   : > { %1498 = vmatpush.bf16.msra.mxu0 %v3245_v9  ;;  %3300 = vmatpush.bf16.msra.mxu3 %v3245_v9  ;;  %v3287_v41 = vld [vmem:[%s4268_s1 + $0x170] sm:$0xff]  ;;  %v2485_v42 = vld [vmem:[%s3510_s15 + $0x38] sm:$0xf]  ;;  %v3136_v46 = vld [vmem:[%s3510_s15 + $0x3c] sm:$0xf] }
  0x19   : > { %1587 = vmatpush.bf16.msra.mxu1 %v3467_v10  ;;  %v3139_v43 = vld [vmem:[%s3510_s15 + $0x50] sm:$0xf0]  ;;  %v2849_v44 = vld [vmem:[%s3510_s15 + $0x310] sm:$0xf]  ;;  %v2487_v47 = vld [vmem:[%s3510_s15 + $0x54] sm:$0xf0] }
  0x1a   : > { %1676 = vmatpush.bf16.msra.mxu2 %v3472_v11  ;;  %v3140_v49 = vld [vmem:[%s3510_s15 + $0x58] sm:$0xf0]  ;;  %v2486_v50 = vor.u32 %v3139_v43, %v2485_v42  ;;  %v2850_v51 = vor.u32 %v3230_v45, %v2849_v44  ;;  %v2490_v52 = vor.u32 %v3136_v46, %v2487_v47  ;;  %v3294_v54 = vld [vmem:[%s4268_s1 + $0x1a8] sm:$0xff]  ;;  %v2513_v57 = vld [vmem:[%s3510_s15 + $0x70] sm:$0xf] }
  0x1b   : > { %v2494_v53 = vor.u32 %v3140_v49, %v2493_v48  ;;  %v3278_v55 = vld [vmem:[%s4268_s1 + $0x128] sm:$0xff]  ;;  %v3237_v60 = vld [vmem:[%s3510_s15 + $0x360] sm:$0xf0]  ;;  %v3143_v61 = vld [vmem:[%s3510_s15 + $0x74] sm:$0xf] }
  0x1c   : > { %1499 = vmatpush.bf16.msra.mxu0 %v3244_v12  ;;  %3301 = vmatpush.bf16.msra.mxu3 %v3244_v12  ;;  %v3286_v56 = vld [vmem:[%s4268_s1 + $0x168] sm:$0xff]  ;;  %v2515_v62 = vld [vmem:[%s3510_s15 + $0x8c] sm:$0xf0]  ;;  %v2521_v63 = vld [vmem:[%s3510_s15 + $0x78] sm:$0xf] }
  0x1d   : > { %1588 = vmatpush.bf16.msra.mxu1 %v3482_v13  ;;  %v3146_v58 = vld [vmem:[%s3510_s15 + $0x88] sm:$0xf0]  ;;  %v2877_v59 = vld [vmem:[%s3510_s15 + $0x348] sm:$0xf]  ;;  %v3147_v0 = vld [vmem:[%s3510_s15 + $0x90] sm:$0xf0] }
  0x1e   : > { %1677 = vmatpush.bf16.msra.mxu2 %v3487_v14  ;;  %v2878_v3 = vor.u32 %v3237_v60, %v2877_v59  ;;  %v2522_v6 = vor.u32 %v3147_v0, %v2521_v63  ;;  %v2541_v9 = vld [vmem:[%s3510_s15 + $0xa8] sm:$0xf]  ;;  %v3150_v12 = vld [vmem:[%s3510_s15 + $0xac] sm:$0xf]  ;;  %v3160_v24 = vld [vmem:[%s3510_s15 + $0xf8] sm:$0xf0] }
  0x1f   : > { %v3157_v25 = vld [vmem:[%s3510_s15 + $0xe4] sm:$0xf]  ;;  %v3227_v26 = vld [vmem:[%s3510_s15 + $0x314] sm:$0xf]  ;;  %v2851_v27 = vld [vmem:[%s3510_s15 + $0x32c] sm:$0xf0] }
  0x20   : > { %1500 = vmatpush.bf16.msra.mxu0 %v3243_v15  ;;  %3302 = vmatpush.bf16.msra.mxu3 %v3243_v15  ;;  %v2823_v15 = vld [vmem:[%s3510_s15 + $0x2f4] sm:$0xf0]  ;;  %v2571_v28 = vld [vmem:[%s3510_s15 + $0xfc] sm:$0xf0]  ;;  %v2577_v29 = vld [vmem:[%s3510_s15 + $0xe8] sm:$0xf] }
  0x21   : > { %1589 = vmatpush.bf16.msra.mxu1 %v3497_v16  ;;  %v3161_v30 = vld [vmem:[%s3510_s15 + $0x100] sm:$0xf0]  ;;  %v3168_v42 = vld [vmem:[%s3510_s15 + $0x138] sm:$0xf0]  ;;  %v3271_v48 = vld [vmem:[%s4268_s1 + $0xf0] sm:$0xff] }
  0x22   : > { %1678 = vmatpush.bf16.msra.mxu2 %v3502_v17  ;;  %v3272_v47 = vld [vmem:[%s4268_s1 + $0xf8] sm:$0xff]  ;;  %v3270_v49 = vld [vmem:[%s4268_s1 + $0xe8] sm:$0xff]  ;;  %v3269_v60 = vld [vmem:[%s4268_s1 + $0xe0] sm:$0xff] }
  0x23   : > { %v3268_v63 = vld [vmem:[%s4268_s1 + $0xd8] sm:$0xff]  ;;  %v3291_v0 = vld [vmem:[%s4268_s1 + $0x190] sm:$0xff] }
  0x24   : > { %1501 = vmatpush.bf16.msra.mxu0 %v3242_v18  ;;  %3303 = vmatpush.bf16.msra.mxu3 %v3242_v18  ;;  %v3154_v18 = vld [vmem:[%s3510_s15 + $0xc8] sm:$0xf0] }
  0x25   : > { %1590 = vmatpush.bf16.msra.mxu1 %v3517_v19 }
  0x26   : > { %1679 = vmatpush.bf16.msra.mxu2 %v3522_v20 }
  0x28   : > { %1502 = vmatpush.bf16.msra.mxu0 %v3241_v21  ;;  %3304 = vmatpush.bf16.msra.mxu3 %v3241_v21 }
  0x29   : > { %1591 = vmatpush.bf16.msra.mxu1 %v3530_v22 }
  0x2a   : > { %1680 = vmatpush.bf16.msra.mxu2 %v3535_v23 }
  0x2b   : > { %1503 = vmatmul.bf16.vlgmr.msra.gmra.mxu0 %v2458_v34  ;;  %1568 = vmatmul.bf16.vlgmr.msra.gmra.mxu3 %v2822_v35  ;;  %v3276_v34 = vld [vmem:[%s4268_s1 + $0x118] sm:$0xff] }
  0x2c   : > { %1851 = vmatpush.bf16.msrb.mxu0 %v3280_v33  ;;  %1592 = vmatmul.bf16.vlgmr.msra.gmra.mxu1 %v2462_v36  ;;  %v2574_v33 = vor.u32 %v3157_v25, %v2571_v28  ;;  %v2597_v35 = vld [vmem:[%s3510_s15 + $0x118] sm:$0xf]  ;;  %v3167_v36 = vld [vmem:[%s3510_s15 + $0x130] sm:$0xf0]  ;;  %v3238_v25 = vld [vmem:[%s3510_s15 + $0x368] sm:$0xf0] }
  0x2d   : > { %1681 = vmatmul.bf16.vlgmr.msra.gmra.mxu2 %v2466_v37  ;;  %1940 = vmatpush.bf16.msrb.mxu1 %v3288_v38  ;;  %v3164_v37 = vld [vmem:[%s3510_s15 + $0x11c] sm:$0xf]  ;;  %v3234_v38 = vld [vmem:[%s3510_s15 + $0x34c] sm:$0xf]  ;;  %v2598_v43 = vor.u32 %v3167_v36, %v2597_v35  ;;  %v3189_v28 = vld [vmem:[%s3510_s15 + $0x1e0] sm:$0xf0] }
  0x2e   : > { %2029 = vmatpush.bf16.msrb.mxu2 %v3296_v32  ;;  %3305 = vmatpush.bf16.msrb.mxu3 %v3421_v1  ;;  %v2514_v1 = vor.u32 %v3146_v58, %v2513_v57  ;;  %v2854_v32 = vor.u32 %v3227_v26, %v2851_v27  ;;  %v3175_v57 = vld [vmem:[%s3510_s15 + $0x170] sm:$0xf0]  ;;  %v2683_v26 = vld [vmem:[%s3510_s15 + $0x1dc] sm:$0xf0]  ;;  %v2689_v27 = vld [vmem:[%s3510_s15 + $0x1c8] sm:$0xf] }
  0x2f   : > { %v3282_v35 = vld [vmem:[%s4268_s1 + $0x148] sm:$0xff] }
  0x30   : > { %1852 = vmatpush.bf16.msrb.mxu0 %v3279_v40  ;;  %v2599_v40 = vld [vmem:[%s3510_s15 + $0x134] sm:$0xf0] }
  0x31   : > { %1941 = vmatpush.bf16.msrb.mxu1 %v3287_v41  ;;  %v2605_v41 = vld [vmem:[%s3510_s15 + $0x120] sm:$0xf]  ;;  %v2602_v45 = vor.u32 %v3164_v37, %v2599_v40 }
  0x32   : > { %2030 = vmatpush.bf16.msrb.mxu2 %v3295_v39  ;;  %3306 = vmatpush.bf16.msrb.mxu3 %v3436_v4  ;;  %v2518_v4 = vor.u32 %v3143_v61, %v2515_v62  ;;  %v2879_v39 = vld [vmem:[%s3510_s15 + $0x364] sm:$0xf0]  ;;  %v2606_v46 = vor.u32 %v3168_v42, %v2605_v41  ;;  %v2709_v42 = vld [vmem:[%s3510_s15 + $0x1f8] sm:$0xf] }
  0x33   : > { %v2882_v44 = vor.u32 %v3234_v38, %v2879_v39 }
  0x34   : > { %1853 = vmatpush.bf16.msrb.mxu0 %v3278_v55  ;;  %v2627_v55 = vld [vmem:[%s3510_s15 + $0x16c] sm:$0xf0] }
  0x35   : > { %1942 = vmatpush.bf16.msrb.mxu1 %v3286_v56  ;;  %v2633_v56 = vld [vmem:[%s3510_s15 + $0x158] sm:$0xf] }
  0x36   : > { %3307 = vmatpush.bf16.msrb.mxu3 %v3451_v7  ;;  %2031 = vmatpush.bf16.msrb.mxu2 %v3294_v54  ;;  %v3293_v7 = vld [vmem:[%s4268_s1 + $0x1a0] sm:$0xff]  ;;  %v3224_v54 = vld [vmem:[%s3510_s15 + $0x2f8] sm:$0xf0]  ;;  %v2634_v62 = vor.u32 %v3175_v57, %v2633_v56 }
  0x3a   : > { %3308 = vmatpush.bf16.msrb.mxu3 %v3467_v10  ;;  %2032 = vmatpush.bf16.msrb.mxu2 %v3293_v7  ;;  %v3153_v10 = vld [vmem:[%s3510_s15 + $0xc0] sm:$0xf0]  ;;  %v2653_v7 = vld [vmem:[%s3510_s15 + $0x188] sm:$0xf] }
  0x3b   : > { %1508 = vmatmul.bf16.gmra.mxu0 %v2486_v50  ;;  %1573 = vmatmul.bf16.gmra.mxu3 %v2850_v51  ;;  %v2625_v50 = vld [vmem:[%s3510_s15 + $0x150] sm:$0xf]  ;;  %v3174_v51 = vld [vmem:[%s3510_s15 + $0x168] sm:$0xf0] }
  0x3c   : > { %1597 = vmatmul.bf16.gmra.mxu1 %v2490_v52  ;;  %v3171_v52 = vld [vmem:[%s3510_s15 + $0x154] sm:$0xf]  ;;  %v2626_v58 = vor.u32 %v3174_v51, %v2625_v50 }
  0x3d   : > { %1686 = vmatmul.bf16.gmra.mxu2 %v2494_v53  ;;  %v2829_v53 = vld [vmem:[%s3510_s15 + $0x2e0] sm:$0xf]  ;;  %v2630_v61 = vor.u32 %v3171_v52, %v2627_v55 }
  0x3e   : > { %3309 = vmatpush.bf16.msrb.mxu3 %v3482_v13  ;;  %v3220_v13 = vld [vmem:[%s3510_s15 + $0x2dc] sm:$0xf]  ;;  %v2830_v59 = vor.u32 %v3224_v54, %v2829_v53 }
  0x3f   : > { %v2826_v21 = vor.u32 %v3220_v13, %v2823_v15  ;;  %v3231_v13 = vld [vmem:[%s3510_s15 + $0x330] sm:$0xf0]  ;;  %v2655_v15 = vld [vmem:[%s3510_s15 + $0x1a4] sm:$0xf0] }
  0x42   : > { %3310 = vmatpush.bf16.msrb.mxu3 %v3497_v16  ;;  %v2549_v16 = vld [vmem:[%s3510_s15 + $0xb0] sm:$0xf] }
  0x46   : > { %3311 = vmatpush.bf16.msrb.mxu3 %v3517_v19  ;;  %v2542_v19 = vor.u32 %v3153_v10, %v2541_v9  ;;  %v3181_v9 = vld [vmem:[%s3510_s15 + $0x1a0] sm:$0xf0]  ;;  %v3178_v10 = vld [vmem:[%s3510_s15 + $0x18c] sm:$0xf] }
  0x4a   : > { %3312 = vmatpush.bf16.msrb.mxu3 %v3530_v22 }
  0x4b   : > { %1513 = vmatmul.bf16.gmra.mxu0 %v2514_v1  ;;  %1578 = vmatmul.bf16.gmra.mxu3 %v2878_v3  ;;  %v3267_v1 = vld [vmem:[%s4268_s1 + $0xd0] sm:$0xff] }
  0x4c   : > { %1602 = vmatmul.bf16.gmra.mxu1 %v2518_v4  ;;  %v3275_v3 = vld [vmem:[%s4268_s1 + $0x110] sm:$0xff] }
  0x4d   : > { %1691 = vmatmul.bf16.gmra.mxu2 %v2522_v6  ;;  %v3283_v4 = vld [vmem:[%s4268_s1 + $0x150] sm:$0xff]  ;;  %v3266_v6 = vld [vmem:[%s4268_s1 + $0xc8] sm:$0xff] }
  0x4e   : > { %3313 = vmatpush.bf16.msra.mxu3 %v3426_v2  ;;  %v2543_v2 = vld [vmem:[%s3510_s15 + $0xc4] sm:$0xf0] }
  0x4f   : > { %v2546_v22 = vor.u32 %v3150_v12, %v2543_v2  ;;  %v2857_v12 = vld [vmem:[%s3510_s15 + $0x318] sm:$0xf]  ;;  %v2661_v2 = vld [vmem:[%s3510_s15 + $0x190] sm:$0xf] }
  0x52   : > { %3314 = vmatpush.bf16.msra.mxu3 %v3441_v5  ;;  %v2550_v5 = vor.u32 %v3154_v18, %v2549_v16  ;;  %v3182_v16 = vld [vmem:[%s3510_s15 + $0x1a8] sm:$0xf0]  ;;  %v2654_v18 = vor.u32 %v3181_v9, %v2653_v7  ;;  %v2737_v7 = vld [vmem:[%s3510_s15 + $0x230] sm:$0xf] }
  0x53   : > { %v3202_v9 = vld [vmem:[%s3510_s15 + $0x248] sm:$0xf0] }
  0x56   : > { %3315 = vmatpush.bf16.msra.mxu3 %v3456_v8  ;;  %v3277_v8 = vld [vmem:[%s4268_s1 + $0x120] sm:$0xff] }
  0x57   : > { %1854 = vmatpush.bf16.msrb.mxu0 %v3277_v8  ;;  %v2681_v8 = vld [vmem:[%s3510_s15 + $0x1c0] sm:$0xf] }
  0x5a   : > { %3316 = vmatpush.bf16.msra.mxu3 %v3472_v11  ;;  %v3285_v11 = vld [vmem:[%s4268_s1 + $0x160] sm:$0xff] }
  0x5b   : > { %1518 = vmatmul.bf16.gmra.mxu0 %v2542_v19  ;;  %1657 = vmatmul.bf16.vlgmr.msrb.gmra.mxu3 %v2826_v21  ;;  %v2858_v19 = vor.u32 %v3231_v13, %v2857_v12  ;;  %v3265_v21 = vld [vmem:[%s4268_s1 + $0xc0] sm:$0xff] }
  0x5c   : > { %1607 = vmatmul.bf16.gmra.mxu1 %v2546_v22  ;;  %1855 = vmatpush.bf16.msrb.mxu0 %v3276_v34  ;;  %v2658_v22 = vor.u32 %v3178_v10, %v2655_v15  ;;  %v3199_v10 = vld [vmem:[%s3510_s15 + $0x234] sm:$0xf]  ;;  %v3137_v12 = vld [vmem:[%s3510_s15 + $0x44] sm:$0xf]  ;;  %v2495_v13 = vld [vmem:[%s3510_s15 + $0x5c] sm:$0xf0] }
  0x5d   : > { %1696 = vmatmul.bf16.gmra.mxu2 %v2550_v5  ;;  %1943 = vmatpush.bf16.msrb.mxu1 %v3285_v11  ;;  %v2662_v5 = vor.u32 %v3182_v16, %v2661_v2  ;;  %v3188_v11 = vld [vmem:[%s3510_s15 + $0x1d8] sm:$0xf0]  ;;  %v2739_v15 = vld [vmem:[%s3510_s15 + $0x24c] sm:$0xf0]  ;;  %v2745_v2 = vld [vmem:[%s3510_s15 + $0x238] sm:$0xf] }
  0x5e   : > { %3317 = vmatpush.bf16.msra.mxu3 %v3487_v14  ;;  %v2569_v14 = vld [vmem:[%s3510_s15 + $0xe0] sm:$0xf]  ;;  %v3203_v16 = vld [vmem:[%s3510_s15 + $0x250] sm:$0xf0] }
  0x5f   : > { %v2570_v31 = vor.u32 %v3160_v24, %v2569_v14  ;;  %v3185_v14 = vld [vmem:[%s3510_s15 + $0x1c4] sm:$0xf]  ;;  %v2885_v24 = vld [vmem:[%s3510_s15 + $0x350] sm:$0xf] }
  0x60   : > { %1856 = vmatpush.bf16.msrb.mxu0 %v3275_v3  ;;  %v3289_v3 = vld [vmem:[%s4268_s1 + $0x180] sm:$0xff] }
  0x62   : > { %3318 = vmatpush.bf16.msra.mxu3 %v3502_v17  ;;  %v2578_v17 = vor.u32 %v3161_v30, %v2577_v29  ;;  %v2682_v29 = vor.u32 %v3188_v11, %v2681_v8  ;;  %v2886_v30 = vor.u32 %v3238_v25, %v2885_v24  ;;  %v2742_v11 = vor.u32 %v3199_v10, %v2739_v15 }
  0x66   : > { %3319 = vmatpush.bf16.msra.mxu3 %v3522_v20  ;;  %v3292_v20 = vld [vmem:[%s4268_s1 + $0x198] sm:$0xff] }
  0x67   : > { %2033 = vmatpush.bf16.msrb.mxu2 %v3292_v20 }
  0x6a   : > { %3320 = vmatpush.bf16.msra.mxu3 %v3535_v23  ;;  %v3284_v23 = vld [vmem:[%s4268_s1 + $0x158] sm:$0xff] }
  0x6b   : > { %1523 = vmatmul.bf16.gmra.mxu0 %v2570_v31  ;;  %1662 = vmatmul.bf16.gmra.mxu3 %v2854_v32  ;;  %v2686_v32 = vor.u32 %v3185_v14, %v2683_v26  ;;  %v2746_v14 = vor.u32 %v3203_v16, %v2745_v2 }
  0x6c   : > { %1612 = vmatmul.bf16.gmra.mxu1 %v2574_v33  ;;  %2034 = vmatpush.bf16.msrb.mxu2 %v3291_v0  ;;  %v2690_v33 = vor.u32 %v3189_v28, %v2689_v27 }
  0x6d   : > { %1701 = vmatmul.bf16.gmra.mxu2 %v2578_v17  ;;  %1944 = vmatpush.bf16.msrb.mxu1 %v3284_v23  ;;  %v3290_v17 = vld [vmem:[%s4268_s1 + $0x188] sm:$0xff] }
  0x6e   : > { %1762 = vmatpush.bf16.msrb.mxu3 %v3272_v47  ;;  %v3274_v23 = vld [vmem:[%s4268_s1 + $0x108] sm:$0xff]  ;;  %v2711_v47 = vld [vmem:[%s3510_s15 + $0x214] sm:$0xf0] }
  0x6f   : > { %1857 = vmatpush.bf16.msrb.mxu0 %v3274_v23  ;;  %v2767_v23 = vld [vmem:[%s3510_s15 + $0x284] sm:$0xf0] }
  0x70   : > { %2035 = vmatpush.bf16.msrb.mxu2 %v3290_v17  ;;  %v3206_v17 = vld [vmem:[%s3510_s15 + $0x26c] sm:$0xf] }
  0x71   : > { %1945 = vmatpush.bf16.msrb.mxu1 %v3283_v4  ;;  %v3273_v4 = vld [vmem:[%s4268_s1 + $0x100] sm:$0xff] }
  0x72   : > { %1763 = vmatpush.bf16.msrb.mxu3 %v3271_v48  ;;  %v2717_v48 = vld [vmem:[%s3510_s15 + $0x200] sm:$0xf] }
  0x73   : > { %1858 = vmatpush.bf16.msrb.mxu0 %v3273_v4  ;;  %v3217_v4 = vld [vmem:[%s3510_s15 + $0x2c0] sm:$0xf0] }
  0x74   : > { %2036 = vmatpush.bf16.msrb.mxu2 %v3289_v3  ;;  %v2801_v3 = vld [vmem:[%s3510_s15 + $0x2a8] sm:$0xf] }
  0x75   : > { %1946 = vmatpush.bf16.msrb.mxu1 %v3282_v35  ;;  %v2773_v35 = vld [vmem:[%s3510_s15 + $0x270] sm:$0xf]  ;;  %v2802_v2 = vor.u32 %v3217_v4, %v2801_v3 }
  0x76   : > { %1764 = vmatpush.bf16.msrb.mxu3 %v3270_v49  ;;  %v3196_v49 = vld [vmem:[%s3510_s15 + $0x218] sm:$0xf0] }
  0x77   : > { %v2718_v57 = vor.u32 %v3196_v49, %v2717_v48 }
  0x7a   : > { %1765 = vmatpush.bf16.msrb.mxu3 %v3269_v60 }
  0x7b   : > { %1528 = vmatmul.bf16.gmra.mxu0 %v2598_v43  ;;  %1667 = vmatmul.bf16.gmra.mxu3 %v2882_v44  ;;  %v3195_v43 = vld [vmem:[%s3510_s15 + $0x210] sm:$0xf0]  ;;  %v3192_v44 = vld [vmem:[%s3510_s15 + $0x1fc] sm:$0xf] }
  0x7c   : > { %1617 = vmatmul.bf16.gmra.mxu1 %v2602_v45  ;;  %v3130_v45 = vld [vmem:[%s3510_s15 + $0xc] sm:$0xf]  ;;  %v2710_v52 = vor.u32 %v3195_v43, %v2709_v42  ;;  %v2714_v56 = vor.u32 %v3192_v44, %v2711_v47 }
  0x7d   : > { %1706 = vmatmul.bf16.gmra.mxu2 %v2606_v46  ;;  %v2467_v46 = vld [vmem:[%s3510_s15 + $0x24] sm:$0xf0] }
  0x7e   : > { %1766 = vmatpush.bf16.msrb.mxu3 %v3268_v63  ;;  %v2470_v53 = vor.u32 %v3130_v45, %v2467_v46  ;;  %v2770_v45 = vor.u32 %v3206_v17, %v2767_v23  ;;  %v3135_v17 = vld [vmem:[%s3510_s15 + $0x30] sm:$0xf0] }
  0x82   : > { %1767 = vmatpush.bf16.msrb.mxu3 %v3267_v1 }
  0x86   : > { %1768 = vmatpush.bf16.msrb.mxu3 %v3266_v6  ;;  %v3281_v6 = vld [vmem:[%s4268_s1 + $0x140] sm:$0xff] }
  0x87   : > { %1947 = vmatpush.bf16.msrb.mxu1 %v3281_v6 }
  0x8a   : > { %1769 = vmatpush.bf16.msrb.mxu3 %v3265_v21  ;;  %v2738_v21 = vor.u32 %v3202_v9, %v2737_v7 }
  0x8b   : > { %1533 = vmatmul.bf16.gmra.mxu0 %v2626_v58  ;;  %1746 = vmatmul.bf16.vlgmr.msra.gmra.mxu3 %v2830_v59 }
  0x8c   : > { %1622 = vmatmul.bf16.gmra.mxu1 %v2630_v61 }
  0x8d   : > { %1711 = vmatmul.bf16.gmra.mxu2 %v2634_v62 }
  0x9b   : > { %1538 = vmatmul.bf16.gmra.mxu0 %v2654_v18  ;;  %1751 = vmatmul.bf16.gmra.mxu3 %v2858_v19 }
  0x9c   : > { %1627 = vmatmul.bf16.gmra.mxu1 %v2658_v22  ;;  %v2498_v22 = vor.u32 %v3137_v12, %v2495_v13 }
  0x9d   : > { %1716 = vmatmul.bf16.gmra.mxu2 %v2662_v5 }
  0xa8   : > { %v1504_v31 = vpop.f32.mrf.mxu0 }
  0xa9   : > { %v1593_v20 = vpop.f32.mrf.mxu1 }
  0xaa   : > { %v1594_v34 = vadd.f32 %v1593_v20, %v1504_v31  ;;  %v3144_v20 = vld [vmem:[%s3510_s15 + $0x7c] sm:$0xf] }
  0xab   : > { %1543 = vmatmul.bf16.gmra.mxu0 %v2682_v29  ;;  %1756 = vmatmul.bf16.gmra.mxu3 %v2886_v30 }
  0xac   : > { %1632 = vmatmul.bf16.gmra.mxu1 %v2686_v32  ;;  %v2765_v32 = vld [vmem:[%s3510_s15 + $0x268] sm:$0xf] }
  0xad   : > { %1721 = vmatmul.bf16.gmra.mxu2 %v2690_v33  ;;  %v3209_v33 = vld [vmem:[%s3510_s15 + $0x280] sm:$0xf0] }
  0xae   : > { %v3716_v36 = vpop.f32.mrf.mxu3 }
  0xb0   : > { %v1682_v37 = vpop.f32.mrf.mxu2  ;;  %v1506_v39 = vpop.f32.mrf.mxu0 }
  0xb1   : > { %v3718_v38 = vadd.f32 %v1682_v37, %v1594_v34  ;;  %v1595_v40 = vpop.f32.mrf.mxu1  ;;  %v2523_v34 = vld [vmem:[%s3510_s15 + $0x94] sm:$0xf0]  ;;  %v3210_v37 = vld [vmem:[%s3510_s15 + $0x288] sm:$0xf0] }
  0xb2   : > { %v1596_v41 = vadd.f32 %v1595_v40, %v1506_v39  ;;  %v2526_v42 = vor.u32 %v3144_v20, %v2523_v34  ;;  %v2774_v46 = vor.u32 %v3210_v37, %v2773_v35 }
  0xb6   : > { %v3728_v50 = vpop.f32.mrf.mxu3 }
  0xb8   : > { %v1684_v51 = vpop.f32.mrf.mxu2  ;;  %v1509_v55 = vpop.f32.mrf.mxu0 }
  0xb9   : > { %v3730_v54 = vadd.f32 %v1684_v51, %v1596_v41  ;;  %v1598_v58 = vpop.f32.mrf.mxu1  ;;  %v2766_v41 = vor.u32 %v3209_v33, %v2765_v32  ;;  %v2475_v32 = vld [vmem:[%s3510_s15 + $0x2c] sm:$0xf0]  ;;  %v2481_v33 = vld [vmem:[%s3510_s15 + $0x18] sm:$0xf] }
  0xba   : > { %v1599_v59 = vadd.f32 %v1598_v58, %v1509_v55  ;;  %v2793_v58 = vld [vmem:[%s3510_s15 + $0x2a0] sm:$0xf] }
  0xbb   : > { %1548 = vmatmul.bf16.gmra.mxu0 %v2710_v52  ;;  %1770 = vmatmul.bf16.vlgmr.msrb.gmra.mxu3 %v2470_v53 }
  0xbc   : > { %1637 = vmatmul.bf16.gmra.mxu1 %v2714_v56 }
  0xbd   : > { %1726 = vmatmul.bf16.gmra.mxu2 %v2718_v57 }
  0xbe   : > { %v3732_v60 = vpop.f32.mrf.mxu3 }
  0xc0   : > { %v1687_v61 = vpop.f32.mrf.mxu2  ;;  %v1511_v63 = vpop.f32.mrf.mxu0 }
  0xc1   : > { %v3734_v62 = vadd.f32 %v1687_v61, %v1599_v59  ;;  %v1600_v0 = vpop.f32.mrf.mxu1  ;;  %v3216_v59 = vld [vmem:[%s3510_s15 + $0x2b8] sm:$0xf0]  ;;  %v3213_v61 = vld [vmem:[%s3510_s15 + $0x2a4] sm:$0xf] }
  0xc2   : > { %v1601_v1 = vadd.f32 %v1600_v0, %v1511_v63  ;;  %v3151_v63 = vld [vmem:[%s3510_s15 + $0xb4] sm:$0xf]  ;;  %v2551_v0 = vld [vmem:[%s3510_s15 + $0xcc] sm:$0xf0]  ;;  %v2794_v9 = vor.u32 %v3216_v59, %v2793_v58  ;;  %v2501_v58 = vld [vmem:[%s3510_s15 + $0x48] sm:$0xf] }
  0xc3   : > { %v2554_v10 = vor.u32 %v3151_v63, %v2551_v0  ;;  %v3141_v59 = vld [vmem:[%s3510_s15 + $0x60] sm:$0xf0]  ;;  %v2503_v63 = vld [vmem:[%s3510_s15 + $0x64] sm:$0xf0]  ;;  %v2509_v0 = vld [vmem:[%s3510_s15 + $0x50] sm:$0xf] }
  0xc6   : > { %v3753_v18 = vpop.f32.mrf.mxu3 }
  0xc8   : > { %v1689_v19 = vpop.f32.mrf.mxu2  ;;  %v1514_v8 = vpop.f32.mrf.mxu0 }
  0xc9   : > { %v3755_v5 = vadd.f32 %v1689_v19, %v1601_v1  ;;  %v1603_v24 = vpop.f32.mrf.mxu1  ;;  %v2795_v1 = vld [vmem:[%s3510_s15 + $0x2bc] sm:$0xf0] }
  0xca   : > { %v1604_v25 = vadd.f32 %v1603_v24, %v1514_v8  ;;  %v2798_v15 = vor.u32 %v3213_v61, %v2795_v1  ;;  %v3138_v61 = vld [vmem:[%s3510_s15 + $0x4c] sm:$0xf] }
  0xcb   : > { %1553 = vmatmul.bf16.gmra.mxu0 %v2738_v21  ;;  %1775 = vmatmul.bf16.gmra.mxu3 %v2498_v22  ;;  %v3142_v1 = vld [vmem:[%s3510_s15 + $0x68] sm:$0xf0] }
  0xcc   : > { %1642 = vmatmul.bf16.gmra.mxu1 %v2742_v11 }
  0xcd   : > { %1731 = vmatmul.bf16.gmra.mxu2 %v2746_v14 }
  0xce   : > { %v3757_v26 = vpop.f32.mrf.mxu3 }
  0xd0   : > { %v1692_v27 = vpop.f32.mrf.mxu2  ;;  %v1516_v29 = vpop.f32.mrf.mxu0 }
  0xd1   : > { %v3759_v28 = vadd.f32 %v1692_v27, %v1604_v25  ;;  %v1605_v30 = vpop.f32.mrf.mxu1  ;;  %v3158_v25 = vld [vmem:[%s3510_s15 + $0xec] sm:$0xf]  ;;  %v2579_v27 = vld [vmem:[%s3510_s15 + $0x104] sm:$0xf0] }
  0xd2   : > { %v1606_v31 = vadd.f32 %v1605_v30, %v1516_v29  ;;  %v2473_v29 = vld [vmem:[%s3510_s15 + $0x10] sm:$0xf]  ;;  %v3134_v30 = vld [vmem:[%s3510_s15 + $0x28] sm:$0xf0]  ;;  %v2582_v23 = vor.u32 %v3158_v25, %v2579_v27  ;;  %v3172_v25 = vld [vmem:[%s3510_s15 + $0x15c] sm:$0xf] }
  0xd3   : > { %v2474_v35 = vor.u32 %v3134_v30, %v2473_v29  ;;  %v2635_v27 = vld [vmem:[%s3510_s15 + $0x174] sm:$0xf0]  ;;  %v2529_v29 = vld [vmem:[%s3510_s15 + $0x80] sm:$0xf]  ;;  %v3148_v30 = vld [vmem:[%s3510_s15 + $0x98] sm:$0xf0] }
  0xd6   : > { %v3769_v39 = vpop.f32.mrf.mxu3 }
  0xd8   : > { %v1694_v40 = vpop.f32.mrf.mxu2  ;;  %v1519_v44 = vpop.f32.mrf.mxu0 }
  0xd9   : > { %v3771_v43 = vadd.f32 %v1694_v40, %v1606_v31  ;;  %v1608_v47 = vpop.f32.mrf.mxu1  ;;  %v3131_v31 = vld [vmem:[%s3510_s15 + $0x14] sm:$0xf] }
  0xda   : > { %v1609_v48 = vadd.f32 %v1608_v47, %v1519_v44 }
  0xdb   : > { %1558 = vmatmul.bf16.gmra.mxu0 %v2766_v41  ;;  %1780 = vmatmul.bf16.gmra.mxu3 %v2526_v42  ;;  %v2478_v41 = vor.u32 %v3131_v31, %v2475_v32  ;;  %v2482_v42 = vor.u32 %v3135_v17, %v2481_v33  ;;  %v3145_v31 = vld [vmem:[%s3510_s15 + $0x84] sm:$0xf]  ;;  %v2531_v32 = vld [vmem:[%s3510_s15 + $0x9c] sm:$0xf0]  ;;  %v2537_v33 = vld [vmem:[%s3510_s15 + $0x88] sm:$0xf] }
  0xdc   : > { %1647 = vmatmul.bf16.gmra.mxu1 %v2770_v45  ;;  %v3149_v17 = vld [vmem:[%s3510_s15 + $0xa0] sm:$0xf0] }
  0xdd   : > { %1736 = vmatmul.bf16.gmra.mxu2 %v2774_v46 }
  0xde   : > { %v1658_v49 = vpop.f32.mrf.mxu3 }
  0xdf   : > { %v3774_v51 = vadd.f32 %v1658_v49, %v3716_v36 }
  0xe0   : > { %v1697_v52 = vpop.f32.mrf.mxu2  ;;  %v1521_v55 = vpop.f32.mrf.mxu0 }
  0xe1   : > { %v3776_v53 = vadd.f32 %v1697_v52, %v1609_v48  ;;  %v1610_v56 = vpop.f32.mrf.mxu1 }
  0xe2   : > { %v1611_v57 = vadd.f32 %v1610_v56, %v1521_v55  ;;  %v3165_v56 = vld [vmem:[%s3510_s15 + $0x124] sm:$0xf] }
  0xe6   : > { %v1660_v6 = vpop.f32.mrf.mxu3 }
  0xe7   : > { %v3787_v7 = vadd.f32 %v1660_v6, %v3728_v50 }
  0xe8   : > { %v1699_v36 = vpop.f32.mrf.mxu2  ;;  %v1524_v13 = vpop.f32.mrf.mxu0 }
  0xe9   : > { %v3789_v12 = vadd.f32 %v1699_v36, %v1611_v57  ;;  %v1613_v16 = vpop.f32.mrf.mxu1  ;;  %v2607_v57 = vld [vmem:[%s3510_s15 + $0x13c] sm:$0xf0]  ;;  %v2502_v36 = vor.u32 %v3141_v59, %v2501_v58  ;;  %v3179_v58 = vld [vmem:[%s3510_s15 + $0x194] sm:$0xf]  ;;  %v2663_v59 = vld [vmem:[%s3510_s15 + $0x1ac] sm:$0xf0] }
  0xea   : > { %v1614_v19 = vadd.f32 %v1613_v16, %v1524_v13  ;;  %v2610_v6 = vor.u32 %v3165_v56, %v2607_v57  ;;  %v2506_v13 = vor.u32 %v3138_v61, %v2503_v63  ;;  %v2557_v61 = vld [vmem:[%s3510_s15 + $0xb8] sm:$0xf]  ;;  %v3155_v63 = vld [vmem:[%s3510_s15 + $0xd0] sm:$0xf0] }
  0xeb   : > { %1563 = vmatmul.bf16.gmra.mxu0 %v2794_v9  ;;  %1785 = vmatmul.bf16.gmra.mxu3 %v2554_v10 }
  0xec   : > { %1652 = vmatmul.bf16.gmra.mxu1 %v2798_v15  ;;  %v2510_v15 = vor.u32 %v3142_v1, %v2509_v0  ;;  %v3152_v0 = vld [vmem:[%s3510_s15 + $0xbc] sm:$0xf]  ;;  %v2559_v1 = vld [vmem:[%s3510_s15 + $0xd4] sm:$0xf0] }
  0xed   : > { %1741 = vmatmul.bf16.gmra.mxu2 %v2802_v2 }
  0xee   : > { %v1663_v50 = vpop.f32.mrf.mxu3 }
  0xef   : > { %v3792_v21 = vadd.f32 %v1663_v50, %v3732_v60 }
  0xf0   : > { %v1702_v22 = vpop.f32.mrf.mxu2  ;;  %v1526_v11 = vpop.f32.mrf.mxu0 }
  0xf1   : > { %v3794_v8 = vadd.f32 %v1702_v22, %v1614_v19  ;;  %v1615_v14 = vpop.f32.mrf.mxu1 }
  0xf2   : > { %v1616_v24 = vadd.f32 %v1615_v14, %v1526_v11 }
  0xf6   : > { %v1665_v20 = vpop.f32.mrf.mxu3 }
  0xf7   : > { %v3805_v34 = vadd.f32 %v1665_v20, %v3753_v18 }
  0xf8   : > { %v1704_v60 = vpop.f32.mrf.mxu2  ;;  %v1529_v40 = vpop.f32.mrf.mxu0 }
  0xf9   : > { %v3807_v37 = vadd.f32 %v1704_v60, %v1616_v24  ;;  %v1618_v44 = vpop.f32.mrf.mxu1 }
  0xfa   : > { %v1619_v45 = vadd.f32 %v1618_v44, %v1529_v40  ;;  %v2538_v44 = vor.u32 %v3149_v17, %v2537_v33  ;;  %v2585_v33 = vld [vmem:[%s3510_s15 + $0xf0] sm:$0xf]  ;;  %v3162_v17 = vld [vmem:[%s3510_s15 + $0x108] sm:$0xf0] }
  0xfb   : > { %1790 = vmatmul.bf16.gmra.mxu3 %v2582_v23  ;;  %1859 = vmatmul.bf16.vlgmr.msrb.gmra.mxu0 %v2474_v35  ;;  %v2530_v35 = vor.u32 %v3148_v30, %v2529_v29 }
  0xfc   : > { %1948 = vmatmul.bf16.vlgmr.msrb.gmra.mxu1 %v2478_v41 }
  0xfd   : > { %2037 = vmatmul.bf16.vlgmr.msrb.gmra.mxu2 %v2482_v42  ;;  %v2534_v42 = vor.u32 %v3145_v31, %v2531_v32  ;;  %v3186_v31 = vld [vmem:[%s3510_s15 + $0x1cc] sm:$0xf]  ;;  %v2691_v32 = vld [vmem:[%s3510_s15 + $0x1e4] sm:$0xf0] }
  0xfe   : > { %v1668_v18 = vpop.f32.mrf.mxu3 }
  0xff   : > { %v3810_v46 = vadd.f32 %v1668_v18, %v3757_v26 }
 0x100   : > { %v1707_v47 = vpop.f32.mrf.mxu2  ;;  %v1531_v49 = vpop.f32.mrf.mxu0 }
 0x101   : > { %v3812_v48 = vadd.f32 %v1707_v47, %v1619_v45  ;;  %v1620_v52 = vpop.f32.mrf.mxu1 }
 0x102   : > { %v1621_v55 = vadd.f32 %v1620_v52, %v1531_v49 }
 0x106   : > { %v1670_v3 = vpop.f32.mrf.mxu3 }
 0x107   : > { %v3823_v4 = vadd.f32 %v1670_v3, %v3769_v39  ;;  %v2565_v3 = vld [vmem:[%s3510_s15 + $0xc0] sm:$0xf] }
 0x108   : > { %v1709_v26 = vpop.f32.mrf.mxu2  ;;  %v1534_v10 = vpop.f32.mrf.mxu0 }
 0x109   : > { %v3825_v9 = vadd.f32 %v1709_v26, %v1621_v55  ;;  %v1623_v2 = vpop.f32.mrf.mxu1  ;;  %v3156_v26 = vld [vmem:[%s3510_s15 + $0xd8] sm:$0xf0] }
 0x10a   : > { %v1624_v16 = vadd.f32 %v1623_v2, %v1534_v10 }
 0x10b   : > { %1795 = vmatmul.bf16.gmra.mxu3 %v2610_v6  ;;  %1864 = vmatmul.bf16.gmra.mxu0 %v2502_v36 }
 0x10c   : > { %1953 = vmatmul.bf16.gmra.mxu1 %v2506_v13  ;;  %v2558_v13 = vor.u32 %v3155_v63, %v2557_v61 }
 0x10d   : > { %2042 = vmatmul.bf16.gmra.mxu2 %v2510_v15 }
 0x10e   : > { %v1747_v39 = vpop.f32.mrf.mxu3 }
 0x10f   : > { %v3828_v50 = vadd.f32 %v1747_v39, %v3774_v51  ;;  %v2638_v51 = vor.u32 %v3172_v25, %v2635_v27  ;;  %v2566_v39 = vor.u32 %v3156_v26, %v2565_v3  ;;  %v3193_v3 = vld [vmem:[%s3510_s15 + $0x204] sm:$0xf]  ;;  %v2719_v26 = vld [vmem:[%s3510_s15 + $0x21c] sm:$0xf0] }
 0x110   : > { %v1712_v19 = vpop.f32.mrf.mxu2  ;;  %v1536_v11 = vpop.f32.mrf.mxu0 }
 0x111   : > { %v3830_v22 = vadd.f32 %v1712_v19, %v1624_v16  ;;  %v1625_v14 = vpop.f32.mrf.mxu1  ;;  %v2562_v16 = vor.u32 %v3152_v0, %v2559_v1 }
 0x112   : > { %v1626_v24 = vadd.f32 %v1625_v14, %v1536_v11 }
 0x116   : > { %v1749_v20 = vpop.f32.mrf.mxu3 }
 0x117   : > { %v3841_v23 = vadd.f32 %v1749_v20, %v3787_v7  ;;  %v3159_v20 = vld [vmem:[%s3510_s15 + $0xf4] sm:$0xf] }
 0x118   : > { %v1714_v60 = vpop.f32.mrf.mxu2  ;;  %v1539_v41 = vpop.f32.mrf.mxu0 }
 0x119   : > { %v3843_v40 = vadd.f32 %v1714_v60, %v1626_v24  ;;  %v1628_v45 = vpop.f32.mrf.mxu1  ;;  %v2587_v60 = vld [vmem:[%s3510_s15 + $0x10c] sm:$0xf0] }
 0x11a   : > { %v1629_v18 = vadd.f32 %v1628_v45, %v1539_v41  ;;  %v2586_v45 = vor.u32 %v3162_v17, %v2585_v33 }
 0x11b   : > { %1800 = vmatmul.bf16.gmra.mxu3 %v2638_v51  ;;  %1869 = vmatmul.bf16.gmra.mxu0 %v2530_v35  ;;  %v2593_v51 = vld [vmem:[%s3510_s15 + $0xf8] sm:$0xf]  ;;  %v3163_v35 = vld [vmem:[%s3510_s15 + $0x110] sm:$0xf0] }
 0x11c   : > { %1958 = vmatmul.bf16.gmra.mxu1 %v2534_v42 }
 0x11d   : > { %2047 = vmatmul.bf16.gmra.mxu2 %v2538_v44 }
 0x11e   : > { %v1752_v7 = vpop.f32.mrf.mxu3 }
 0x11f   : > { %v3846_v49 = vadd.f32 %v1752_v7, %v3792_v21  ;;  %v2666_v21 = vor.u32 %v3179_v58, %v2663_v59 }
 0x120   : > { %v1717_v47 = vpop.f32.mrf.mxu2  ;;  %v1541_v55 = vpop.f32.mrf.mxu0 }
 0x121   : > { %v3848_v52 = vadd.f32 %v1717_v47, %v1629_v18  ;;  %v1630_v56 = vpop.f32.mrf.mxu1  ;;  %v2590_v47 = vor.u32 %v3159_v20, %v2587_v60 }
 0x122   : > { %v1631_v57 = vadd.f32 %v1630_v56, %v1541_v55  ;;  %v2594_v55 = vor.u32 %v3163_v35, %v2593_v51 }
 0x126   : > { %v1754_v6 = vpop.f32.mrf.mxu3 }
 0x127   : > { %v3859_v10 = vadd.f32 %v1754_v6, %v3805_v34  ;;  %v2613_v6 = vld [vmem:[%s3510_s15 + $0x128] sm:$0xf] }
 0x128   : > { %v1719_v36 = vpop.f32.mrf.mxu2  ;;  %v1544_v2 = vpop.f32.mrf.mxu0 }
 0x129   : > { %v3861_v15 = vadd.f32 %v1719_v36, %v1631_v57  ;;  %v1633_v19 = vpop.f32.mrf.mxu1  ;;  %v3169_v36 = vld [vmem:[%s3510_s15 + $0x140] sm:$0xf0] }
 0x12a   : > { %v1634_v11 = vadd.f32 %v1633_v19, %v1544_v2  ;;  %v2621_v2 = vld [vmem:[%s3510_s15 + $0x130] sm:$0xf] }
 0x12b   : > { %1805 = vmatmul.bf16.gmra.mxu3 %v2666_v21  ;;  %1874 = vmatmul.bf16.gmra.mxu0 %v2558_v13  ;;  %v3166_v21 = vld [vmem:[%s3510_s15 + $0x12c] sm:$0xf]  ;;  %v2615_v13 = vld [vmem:[%s3510_s15 + $0x144] sm:$0xf0] }
 0x12c   : > { %1963 = vmatmul.bf16.gmra.mxu1 %v2562_v16  ;;  %v3170_v16 = vld [vmem:[%s3510_s15 + $0x148] sm:$0xf0] }
 0x12d   : > { %2052 = vmatmul.bf16.gmra.mxu2 %v2566_v39 }
 0x12e   : > { %v1757_v34 = vpop.f32.mrf.mxu3 }
 0x12f   : > { %v3864_v24 = vadd.f32 %v1757_v34, %v3810_v46  ;;  %v2694_v46 = vor.u32 %v3186_v31, %v2691_v32  ;;  %v2614_v34 = vor.u32 %v3169_v36, %v2613_v6 }
 0x130   : > { %v1722_v14 = vpop.f32.mrf.mxu2  ;;  %v1546_v27 = vpop.f32.mrf.mxu0 }
 0x131   : > { %v3866_v25 = vadd.f32 %v1722_v14, %v1634_v11  ;;  %v1635_v29 = vpop.f32.mrf.mxu1 }
 0x132   : > { %v1636_v30 = vadd.f32 %v1635_v29, %v1546_v27  ;;  %v2618_v29 = vor.u32 %v3166_v21, %v2615_v13 }
 0x136   : > { %v1759_v41 = vpop.f32.mrf.mxu3 }
 0x137   : > { %v3877_v44 = vadd.f32 %v1759_v41, %v3823_v4  ;;  %v3200_v41 = vld [vmem:[%s3510_s15 + $0x23c] sm:$0xf] }
 0x138   : > { %v1724_v42 = vpop.f32.mrf.mxu2  ;;  %v1549_v7 = vpop.f32.mrf.mxu0 }
 0x139   : > { %v3879_v18 = vadd.f32 %v1724_v42, %v1636_v30  ;;  %v1638_v56 = vpop.f32.mrf.mxu1  ;;  %v2622_v30 = vor.u32 %v3170_v16, %v2621_v2  ;;  %v2747_v42 = vld [vmem:[%s3510_s15 + $0x254] sm:$0xf0] }
 0x13a   : > { %v1639_v57 = vadd.f32 %v1638_v56, %v1549_v7  ;;  %v3173_v7 = vld [vmem:[%s3510_s15 + $0x164] sm:$0xf] }
 0x13b   : > { %1810 = vmatmul.bf16.gmra.mxu3 %v2694_v46  ;;  %1879 = vmatmul.bf16.gmra.mxu0 %v2586_v45  ;;  %v2641_v46 = vld [vmem:[%s3510_s15 + $0x160] sm:$0xf]  ;;  %v3176_v45 = vld [vmem:[%s3510_s15 + $0x178] sm:$0xf0]  ;;  %v3177_v56 = vld [vmem:[%s3510_s15 + $0x180] sm:$0xf0] }
 0x13c   : > { %1968 = vmatmul.bf16.gmra.mxu1 %v2590_v47  ;;  %v2643_v47 = vld [vmem:[%s3510_s15 + $0x17c] sm:$0xf0] }
 0x13d   : > { %2057 = vmatmul.bf16.gmra.mxu2 %v2594_v55  ;;  %v2649_v55 = vld [vmem:[%s3510_s15 + $0x168] sm:$0xf] }
 0x13e   : > { %v1771_v4 = vpop.f32.mrf.mxu3 }
 0x13f   : > { %v3882_v59 = vadd.f32 %v1771_v4, %v3718_v38  ;;  %v2722_v38 = vor.u32 %v3193_v3, %v2719_v26  ;;  %v2646_v3 = vor.u32 %v3173_v7, %v2643_v47  ;;  %v2650_v26 = vor.u32 %v3177_v56, %v2649_v55 }
 0x140   : > { %v1727_v58 = vpop.f32.mrf.mxu2  ;;  %v1551_v63 = vpop.f32.mrf.mxu0 }
 0x141   : > { %v3884_v61 = vadd.f32 %v1727_v58, %v1639_v57  ;;  %v1640_v0 = vpop.f32.mrf.mxu1 }
 0x142   : > { %v1641_v1 = vadd.f32 %v1640_v0, %v1551_v63  ;;  %v2642_v63 = vor.u32 %v3176_v45, %v2641_v46 }
 0x146   : > { %v1773_v39 = vpop.f32.mrf.mxu3 }
 0x147   : > { %v3895_v11 = vadd.f32 %v1773_v39, %v3730_v54 }
 0x148   : > { %v1729_v19 = vpop.f32.mrf.mxu2  ;;  %v1554_v27 = vpop.f32.mrf.mxu0 }
 0x149   : > { %v3897_v14 = vadd.f32 %v1729_v19, %v1641_v1  ;;  %v1643_v31 = vpop.f32.mrf.mxu1 }
 0x14a   : > { %v1644_v32 = vadd.f32 %v1643_v31, %v1554_v27  ;;  %v2669_v27 = vld [vmem:[%s3510_s15 + $0x198] sm:$0xf] }
 0x14b   : > { %1815 = vmatmul.bf16.gmra.mxu3 %v2722_v38  ;;  %1884 = vmatmul.bf16.gmra.mxu0 %v2614_v34  ;;  %v3207_v38 = vld [vmem:[%s3510_s15 + $0x274] sm:$0xf]  ;;  %v2775_v34 = vld [vmem:[%s3510_s15 + $0x28c] sm:$0xf0]  ;;  %v2671_v31 = vld [vmem:[%s3510_s15 + $0x1b4] sm:$0xf0] }
 0x14c   : > { %1973 = vmatmul.bf16.gmra.mxu1 %v2618_v29  ;;  %v3183_v29 = vld [vmem:[%s3510_s15 + $0x1b0] sm:$0xf0] }
 0x14d   : > { %2062 = vmatmul.bf16.gmra.mxu2 %v2622_v30  ;;  %v3180_v30 = vld [vmem:[%s3510_s15 + $0x19c] sm:$0xf] }
 0x14e   : > { %v1776_v54 = vpop.f32.mrf.mxu3  ;;  %v2674_v46 = vor.u32 %v3180_v30, %v2671_v31 }
 0x14f   : > { %v3900_v17 = vadd.f32 %v1776_v54, %v3734_v62  ;;  %v2750_v62 = vor.u32 %v3200_v41, %v2747_v42  ;;  %v3184_v54 = vld [vmem:[%s3510_s15 + $0x1b8] sm:$0xf0] }
 0x150   : > { %v1732_v33 = vpop.f32.mrf.mxu2  ;;  %v1556_v60 = vpop.f32.mrf.mxu0 }
 0x151   : > { %v3902_v20 = vadd.f32 %v1732_v33, %v1644_v32  ;;  %v1645_v51 = vpop.f32.mrf.mxu1  ;;  %v2677_v32 = vld [vmem:[%s3510_s15 + $0x1a0] sm:$0xf] }
 0x152   : > { %v1646_v35 = vadd.f32 %v1645_v51, %v1556_v60  ;;  %v2678_v45 = vor.u32 %v3184_v54, %v2677_v32  ;;  %v2282_v32 = vld [vmem:[%s4271_s4 + $0x78] sm:$0xff] }
 0x153   : > { %2284 = vmatpush.msra.mxu3 %v2282_v32 }
 0x156   : > { %v1778_v57 = vpop.f32.mrf.mxu3 }
 0x157   : > { %v3913_v58 = vadd.f32 %v1778_v57, %v3755_v5 }
 0x158   : > { %v1734_v4 = vpop.f32.mrf.mxu2  ;;  %v1559_v1 = vpop.f32.mrf.mxu0 }
 0x159   : > { %v3915_v0 = vadd.f32 %v1734_v4, %v1646_v35  ;;  %v1648_v6 = vpop.f32.mrf.mxu1  ;;  %v2670_v35 = vor.u32 %v3183_v29, %v2669_v27 }
 0x15a   : > { %v1649_v36 = vadd.f32 %v1648_v6, %v1559_v1  ;;  %v3214_v1 = vld [vmem:[%s3510_s15 + $0x2ac] sm:$0xf] }
 0x15b   : > { %1820 = vmatmul.bf16.gmra.mxu3 %v2750_v62  ;;  %1889 = vmatmul.bf16.gmra.mxu0 %v2642_v63  ;;  %v3190_v6 = vld [vmem:[%s3510_s15 + $0x1e8] sm:$0xf0] }
 0x15c   : > { %1978 = vmatmul.bf16.gmra.mxu1 %v2646_v3  ;;  %v2803_v3 = vld [vmem:[%s3510_s15 + $0x2c4] sm:$0xf0] }
 0x15d   : > { %2067 = vmatmul.bf16.gmra.mxu2 %v2650_v26  ;;  %v2697_v26 = vld [vmem:[%s3510_s15 + $0x1d0] sm:$0xf] }
 0x15e   : > { %v1781_v5 = vpop.f32.mrf.mxu3 }
 0x15f   : > { %v3918_v13 = vadd.f32 %v1781_v5, %v3759_v28  ;;  %v2778_v28 = vor.u32 %v3207_v38, %v2775_v34  ;;  %v2699_v5 = vld [vmem:[%s3510_s15 + $0x1ec] sm:$0xf0]  ;;  %v2698_v34 = vor.u32 %v3190_v6, %v2697_v26 }
 0x160   : > { %v1737_v21 = vpop.f32.mrf.mxu2  ;;  %v1561_v16 = vpop.f32.mrf.mxu0 }
 0x161   : > { %v3920_v2 = vadd.f32 %v1737_v21, %v1649_v36  ;;  %v1650_v39 = vpop.f32.mrf.mxu1  ;;  %v3187_v36 = vld [vmem:[%s3510_s15 + $0x1d4] sm:$0xf]  ;;  %v2705_v21 = vld [vmem:[%s3510_s15 + $0x1d8] sm:$0xf] }
 0x162   : > { %v1651_v19 = vadd.f32 %v1650_v39, %v1561_v16  ;;  %v3191_v16 = vld [vmem:[%s3510_s15 + $0x1f0] sm:$0xf0]  ;;  %v2702_v30 = vor.u32 %v3187_v36, %v2699_v5 }
 0x163   : > { %v2706_v31 = vor.u32 %v3191_v16, %v2705_v21 }
 0x166   : > { %v1783_v33 = vpop.f32.mrf.mxu3 }
 0x167   : > { %v3931_v51 = vadd.f32 %v1783_v33, %v3771_v43 }
 0x168   : > { %v1739_v60 = vpop.f32.mrf.mxu2  ;;  %v1564_v42 = vpop.f32.mrf.mxu0 }
 0x169   : > { %v3933_v41 = vadd.f32 %v1739_v60, %v1651_v19  ;;  %v1653_v7 = vpop.f32.mrf.mxu1 }
 0x16a   : > { %v1654_v47 = vadd.f32 %v1653_v7, %v1564_v42 }
 0x16b   : > { %1825 = vmatmul.bf16.gmra.mxu3 %v2778_v28  ;;  %1894 = vmatmul.bf16.gmra.mxu0 %v2670_v35 }
 0x16c   : > { %1983 = vmatmul.bf16.gmra.mxu1 %v2674_v46 }
 0x16d   : > { %2072 = vmatmul.bf16.gmra.mxu2 %v2678_v45  ;;  %v3963_v45 = vld [vmem:[%s4269_s2] ss:$0 sm:$0xff] }
 0x16e   : > { %v1786_v43 = vpop.f32.mrf.mxu3 }
 0x16f   : > { %v3936_v56 = vadd.f32 %v1786_v43, %v3776_v53  ;;  %v2806_v53 = vor.u32 %v3214_v1, %v2803_v3  ;;  %v2831_v43 = vld [vmem:[%s3510_s15 + $0x2fc] sm:$0xf0]  ;;  %v2733_v1 = vld [vmem:[%s3510_s15 + $0x210] sm:$0xf]  ;;  %v3198_v3 = vld [vmem:[%s3510_s15 + $0x228] sm:$0xf0] }
 0x170   : > { %v1742_v55 = vpop.f32.mrf.mxu2  ;;  %v1566_v4 = vpop.f32.mrf.mxu0 }
 0x171   : > { %v3938_v57 = vadd.f32 %v1742_v55, %v1654_v47  ;;  %v1655_v62 = vpop.f32.mrf.mxu1  ;;  %v3221_v47 = vld [vmem:[%s3510_s15 + $0x2e4] sm:$0xf]  ;;  %v2725_v55 = vld [vmem:[%s3510_s15 + $0x208] sm:$0xf] }
 0x172   : > { %v1656_v63 = vadd.f32 %v1655_v62, %v1566_v4  ;;  %v3197_v4 = vld [vmem:[%s3510_s15 + $0x220] sm:$0xf0]  ;;  %v3194_v62 = vld [vmem:[%s3510_s15 + $0x20c] sm:$0xf]  ;;  %v2834_v5 = vor.u32 %v3221_v47, %v2831_v43 }
 0x173   : > { %v2726_v21 = vor.u32 %v3197_v4, %v2725_v55 }
 0x176   : > { %v1788_v39 = vpop.f32.mrf.mxu3 }
 0x177   : > { %v3949_v38 = vadd.f32 %v1788_v39, %v3789_v12 }
 0x178   : > { %v1744_v19 = vpop.f32.mrf.mxu2  ;;  %v1860_v29 = vpop.f32.mrf.mxu0 }
 0x179   : > { %v3951_v27 = vadd.f32 %v1744_v19, %v1656_v63  ;;  %v1861_v54 = vadd.f32 %v1860_v29, %v3882_v59  ;;  %v1949_v33 = vpop.f32.mrf.mxu1  ;;  %v2727_v63 = vld [vmem:[%s3510_s15 + $0x224] sm:$0xf0] }
 0x17a   : > { %v2730_v19 = vor.u32 %v3194_v62, %v2727_v63  ;;  %v3228_v62 = vld [vmem:[%s3510_s15 + $0x31c] sm:$0xf]  ;;  %v2859_v63 = vld [vmem:[%s3510_s15 + $0x334] sm:$0xf0] }
 0x17b   : > { %v1950_v12 = vadd.f32 %v1949_v33, %v1861_v54  ;;  %1830 = vmatmul.bf16.gmra.mxu3 %v2806_v53  ;;  %1899 = vmatmul.bf16.gmra.mxu0 %v2698_v34  ;;  %v2734_v53 = vor.u32 %v3198_v3, %v2733_v1  ;;  %v2281_v34 = vld [vmem:[%s4271_s4 + $0x70] sm:$0xff]  ;;  %v2753_v3 = vld [vmem:[%s3510_s15 + $0x240] sm:$0xf] }
 0x17c   : > { %1988 = vmatmul.bf16.gmra.mxu1 %v2702_v30  ;;  %2285 = vmatpush.msra.mxu3 %v2281_v34 }
 0x17d   : > { %2077 = vmatmul.bf16.gmra.mxu2 %v2706_v31 }
 0x17e   : > { %v3957_v60 = vpop.f32.mrf.mxu3 }
 0x180   : > { %v2038_v28 = vpop.f32.mrf.mxu2  ;;  %v1862_v59 = vpop.f32.mrf.mxu0 }
 0x181   : > { %v2039_v35 = vadd.f32 %v2038_v28, %v1950_v12  ;;  %v1863_v42 = vadd.f32 %v1862_v59, %v3895_v11  ;;  %v1951_v46 = vpop.f32.mrf.mxu1  ;;  %v3977_v11 = vld [vmem:[%s4270_s3] ss:$0 sm:$0xff] }
 0x183   : > { %v1952_v7 = vadd.f32 %v1951_v46, %v1863_v42  ;;  %v2122_v26 = vmul.f32 %v3963_v45, %v2039_v35 }
 0x185   : > { %v2158_v31 = vadd.f32 %v3977_v11, %v2122_v26  ;;  %v3204_v26 = vld [vmem:[%s3510_s15 + $0x258] sm:$0xf0] }
 0x186   : > { %v3979_v6 = vpop.f32.mrf.mxu3  ;;  %v2754_v34 = vor.u32 %v3204_v26, %v2753_v3  ;;  %v3235_v3 = vld [vmem:[%s3510_s15 + $0x354] sm:$0xf]  ;;  %v2887_v26 = vld [vmem:[%s3510_s15 + $0x36c] sm:$0xf0] }
 0x187   : > { %v2190_v12 = vmax.f32 %v2158_v31, 0.0 }
 0x188   : > { %v2040_v36 = vpop.f32.mrf.mxu2  ;;  %v1865_v39 = vpop.f32.mrf.mxu0 }
 0x189   : > { %v2041_v16 = vadd.f32 %v2040_v36, %v1952_v7  ;;  %v1866_v29 = vadd.f32 %v1865_v39, %v3900_v17  ;;  %v1954_v30 = vpop.f32.mrf.mxu1  ;;  %v2755_v36 = vld [vmem:[%s3510_s15 + $0x25c] sm:$0xf0] }
 0x18b   : > { %v2123_v32 = vmul.f32 %v3963_v45, %v2041_v16  ;;  %v1955_v54 = vadd.f32 %v1954_v30, %v1866_v29  ;;  %1835 = vmatmul.bf16.gmra.mxu3 %v2834_v5  ;;  %1904 = vmatmul.bf16.gmra.mxu0 %v2726_v21  ;;  %v2761_v5 = vld [vmem:[%s3510_s15 + $0x248] sm:$0xf]  ;;  %v3205_v21 = vld [vmem:[%s3510_s15 + $0x260] sm:$0xf0] }
 0x18c   : > { %1993 = vmatmul.bf16.gmra.mxu1 %v2730_v19 }
 0x18d   : > { %v2159_v33 = vadd.f32 %v3977_v11, %v2123_v32  ;;  %2082 = vmatmul.bf16.gmra.mxu2 %v2734_v53  ;;  %v2862_v53 = vor.u32 %v3228_v62, %v2859_v63 }
 0x18e   : > { %v1796_v17 = vpop.f32.mrf.mxu3 }
 0x18f   : > { %v2191_v28 = vmax.f32 %v2159_v33, 0.0  ;;  %v3989_v35 = vadd.f32 %v1796_v17, %v3812_v48  ;;  %v3201_v48 = vld [vmem:[%s3510_s15 + $0x244] sm:$0xf]  ;;  %v2280_v33 = vld [vmem:[%s4271_s4 + $0x68] sm:$0xff] }
 0x190   : > { %v2043_v59 = vpop.f32.mrf.mxu2  ;;  %v1867_v7 = vpop.f32.mrf.mxu0  ;;  %v2758_v32 = vor.u32 %v3201_v48, %v2755_v36  ;;  %2286 = vmatpush.msra.mxu3 %v2280_v33  ;;  %v2781_v36 = vld [vmem:[%s3510_s15 + $0x278] sm:$0xf] }
 0x191   : > { %v2222_v42 = vadd.f32 %v2191_v28, %v2190_v12  ;;  %v2044_v46 = vadd.f32 %v2043_v59, %v1955_v54  ;;  %v1868_v47 = vadd.f32 %v1867_v7, %v3913_v58  ;;  %v1956_v43 = vpop.f32.mrf.mxu1  ;;  %v2762_v54 = vor.u32 %v3205_v21, %v2761_v5  ;;  %v3211_v5 = vld [vmem:[%s3510_s15 + $0x290] sm:$0xf0]  ;;  %v2783_v21 = vld [vmem:[%s3510_s15 + $0x294] sm:$0xf0] }
 0x193   : > { %v2124_v55 = vmul.f32 %v3963_v45, %v2044_v46  ;;  %v1957_v4 = vadd.f32 %v1956_v43, %v1868_v47 }
 0x195   : > { %v2160_v1 = vadd.f32 %v3977_v11, %v2124_v55 }
 0x196   : > { %v1798_v39 = vpop.f32.mrf.mxu3 }
 0x197   : > { %v2192_v16 = vmax.f32 %v2160_v1, 0.0  ;;  %v4003_v19 = vadd.f32 %v1798_v39, %v3825_v9  ;;  %v3212_v39 = vld [vmem:[%s3510_s15 + $0x298] sm:$0xf0] }
 0x198   : > { %v2045_v58 = vpop.f32.mrf.mxu2  ;;  %v1870_v31 = vpop.f32.mrf.mxu0 }
 0x199   : > { %v2223_v29 = vadd.f32 %v2222_v42, %v2192_v16  ;;  %v2046_v30 = vadd.f32 %v2045_v58, %v1957_v4  ;;  %v1871_v12 = vadd.f32 %v1870_v31, %v3918_v13  ;;  %v1959_v28 = vpop.f32.mrf.mxu1  ;;  %v2789_v16 = vld [vmem:[%s3510_s15 + $0x280] sm:$0xf] }
 0x19b   : > { %v2125_v17 = vmul.f32 %v3963_v45, %v2046_v30  ;;  %v1960_v9 = vadd.f32 %v1959_v28, %v1871_v12  ;;  %1840 = vmatmul.bf16.gmra.mxu3 %v2862_v53  ;;  %1909 = vmatmul.bf16.gmra.mxu0 %v2754_v34  ;;  %v2782_v30 = vor.u32 %v3211_v5, %v2781_v36  ;;  %v2279_v28 = vld [vmem:[%s4271_s4 + $0x60] sm:$0xff]  ;;  %v3218_v36 = vld [vmem:[%s3510_s15 + $0x2c8] sm:$0xf0]  ;;  %v3215_v5 = vld [vmem:[%s3510_s15 + $0x2b4] sm:$0xf] }
 0x19c   : > { %1998 = vmatmul.bf16.gmra.mxu1 %v2758_v32  ;;  %v2790_v12 = vor.u32 %v3212_v39, %v2789_v16  ;;  %2287 = vmatpush.msra.mxu3 %v2279_v28  ;;  %v3219_v16 = vld [vmem:[%s3510_s15 + $0x2d0] sm:$0xf0] }
 0x19d   : > { %v2161_v59 = vadd.f32 %v3977_v11, %v2125_v17  ;;  %2087 = vmatmul.bf16.gmra.mxu2 %v2762_v54 }
 0x19e   : > { %v1801_v46 = vpop.f32.mrf.mxu3 }
 0x19f   : > { %v2193_v42 = vmax.f32 %v2161_v59, 0.0  ;;  %v4012_v13 = vadd.f32 %v1801_v46, %v3830_v22  ;;  %v3208_v22 = vld [vmem:[%s3510_s15 + $0x27c] sm:$0xf] }
 0x1a0   : > { %v2048_v7 = vpop.f32.mrf.mxu2  ;;  %v1872_v55 = vpop.f32.mrf.mxu0  ;;  %v2786_v33 = vor.u32 %v3208_v22, %v2783_v21  ;;  %v2811_v22 = vld [vmem:[%s3510_s15 + $0x2cc] sm:$0xf0]  ;;  %v2817_v21 = vld [vmem:[%s3510_s15 + $0x2b8] sm:$0xf] }
 0x1a1   : > { %v2224_v47 = vadd.f32 %v2223_v29, %v2193_v42  ;;  %v2049_v43 = vadd.f32 %v2048_v7, %v1960_v9  ;;  %v1873_v4 = vadd.f32 %v1872_v55, %v3931_v51  ;;  %v1961_v62 = vpop.f32.mrf.mxu1  ;;  %v2890_v29 = vor.u32 %v3235_v3, %v2887_v26 }
 0x1a3   : > { %v2126_v63 = vmul.f32 %v3963_v45, %v2049_v43  ;;  %v1962_v1 = vadd.f32 %v1961_v62, %v1873_v4 }
 0x1a5   : > { %v2162_v48 = vadd.f32 %v3977_v11, %v2126_v63 }
 0x1a6   : > { %v1803_v53 = vpop.f32.mrf.mxu3 }
 0x1a7   : > { %v2194_v58 = vmax.f32 %v2162_v48, 0.0  ;;  %v4026_v34 = vadd.f32 %v1803_v53, %v3843_v40  ;;  %v2809_v48 = vld [vmem:[%s3510_s15 + $0x2b0] sm:$0xf] }
 0x1a8   : > { %v2050_v51 = vpop.f32.mrf.mxu2  ;;  %v1875_v54 = vpop.f32.mrf.mxu0 }
 0x1a9   : > { %v2225_v31 = vadd.f32 %v2224_v47, %v2194_v58  ;;  %v2051_v32 = vadd.f32 %v2050_v51, %v1962_v1  ;;  %v1876_v17 = vadd.f32 %v1875_v54, %v3936_v56  ;;  %v1964_v9 = vpop.f32.mrf.mxu1  ;;  %v1792_v58 = vadd.f32 %v3957_v60, %v3794_v8 }
 0x1aa   : > { %v2810_v51 = vor.u32 %v3218_v36, %v2809_v48  ;;  %v2818_v54 = vor.u32 %v3219_v16, %v2817_v21  ;;  %v2839_v48 = vld [vmem:[%s3510_s15 + $0x304] sm:$0xf0] }
 0x1ab   : > { %v2127_v59 = vmul.f32 %v3963_v45, %v2051_v32  ;;  %v1965_v40 = vadd.f32 %v1964_v9, %v1876_v17  ;;  %1845 = vmatmul.bf16.gmra.mxu3 %v2890_v29  ;;  %1914 = vmatmul.bf16.gmra.mxu0 %v2782_v30  ;;  %v2814_v32 = vor.u32 %v3215_v5, %v2811_v22 }
 0x1ac   : > { %2003 = vmatmul.bf16.gmra.mxu1 %v2786_v33  ;;  %v2278_v33 = vld [vmem:[%s4271_s4 + $0x58] sm:$0xff] }
 0x1ad   : > { %v2163_v42 = vadd.f32 %v3977_v11, %v2127_v59  ;;  %2092 = vmatmul.bf16.gmra.mxu2 %v2790_v12  ;;  %2288 = vmatpush.msra.mxu3 %v2278_v33  ;;  %v1794_v59 = vadd.f32 %v3979_v6, %v3807_v37  ;;  %v2845_v37 = vld [vmem:[%s3510_s15 + $0x2f0] sm:$0xf]  ;;  %v3226_v6 = vld [vmem:[%s3510_s15 + $0x308] sm:$0xf0] }
 0x1ae   : > { %v1806_v7 = vpop.f32.mrf.mxu3 }
 0x1af   : > { %v2195_v46 = vmax.f32 %v2163_v42, 0.0  ;;  %v4035_v56 = vadd.f32 %v1806_v7, %v3848_v52 }
 0x1b0   : > { %v2053_v47 = vpop.f32.mrf.mxu2  ;;  %v1877_v4 = vpop.f32.mrf.mxu0 }
 0x1b1   : > { %v2226_v43 = vadd.f32 %v2225_v31, %v2195_v46  ;;  %v2054_v55 = vadd.f32 %v2053_v47, %v1965_v40  ;;  %v1878_v62 = vadd.f32 %v1877_v4, %v3949_v38  ;;  %v1966_v63 = vpop.f32.mrf.mxu1 }
 0x1b3   : > { %v2128_v1 = vmul.f32 %v3963_v45, %v2054_v55  ;;  %v1967_v3 = vadd.f32 %v1966_v63, %v1878_v62 }
 0x1b5   : > { %v2164_v26 = vadd.f32 %v3977_v11, %v2128_v1  ;;  %v2837_v1 = vld [vmem:[%s3510_s15 + $0x2e8] sm:$0xf] }
 0x1b6   : > { %v1808_v39 = vpop.f32.mrf.mxu3 }
 0x1b7   : > { %v2196_v52 = vmax.f32 %v2164_v26, 0.0  ;;  %v4049_v53 = vadd.f32 %v1808_v39, %v3861_v15  ;;  %v3222_v26 = vld [vmem:[%s3510_s15 + $0x2ec] sm:$0xf] }
 0x1b8   : > { %v2055_v38 = vpop.f32.mrf.mxu2  ;;  %v1880_v31 = vpop.f32.mrf.mxu0 }
 0x1b9   : > { %v2227_v29 = vadd.f32 %v2226_v43, %v2196_v52  ;;  %v2056_v30 = vadd.f32 %v2055_v38, %v1967_v3  ;;  %v1881_v12 = vadd.f32 %v1880_v31, %v1792_v58  ;;  %v1969_v28 = vpop.f32.mrf.mxu1  ;;  %v3225_v3 = vld [vmem:[%s3510_s15 + $0x300] sm:$0xf0]  ;;  %v2842_v58 = vor.u32 %v3222_v26, %v2839_v48 }
 0x1ba   : > { %v2838_v21 = vor.u32 %v3225_v3, %v2837_v1  ;;  %v2846_v38 = vor.u32 %v3226_v6, %v2845_v37 }
 0x1bb   : > { %v2129_v17 = vmul.f32 %v3963_v45, %v2056_v30  ;;  %v1970_v8 = vadd.f32 %v1969_v28, %v1881_v12  ;;  %1919 = vmatmul.bf16.gmra.mxu0 %v2810_v51  ;;  %v2277_v51 = vld [vmem:[%s4271_s4 + $0x50] sm:$0xff] }
 0x1bc   : > { %2008 = vmatmul.bf16.gmra.mxu1 %v2814_v32  ;;  %2289 = vmatpush.msra.mxu3 %v2277_v51 }
 0x1bd   : > { %v2165_v15 = vadd.f32 %v3977_v11, %v2129_v17  ;;  %2097 = vmatmul.bf16.gmra.mxu2 %v2818_v54 }
 0x1be   : > { %v1811_v9 = vpop.f32.mrf.mxu3 }
 0x1bf   : > { %v2197_v60 = vmax.f32 %v2165_v15, 0.0  ;;  %v4059_v40 = vadd.f32 %v1811_v9, %v3866_v25 }
 0x1c0   : > { %v2058_v42 = vpop.f32.mrf.mxu2  ;;  %v1882_v47 = vpop.f32.mrf.mxu0 }
 0x1c1   : > { %v2228_v46 = vadd.f32 %v2227_v29, %v2197_v60  ;;  %v2059_v7 = vadd.f32 %v2058_v42, %v1970_v8  ;;  %v1883_v43 = vadd.f32 %v1882_v47, %v1794_v59  ;;  %v1971_v55 = vpop.f32.mrf.mxu1  ;;  %v3229_v47 = vld [vmem:[%s3510_s15 + $0x324] sm:$0xf] }
 0x1c3   : > { %v2130_v4 = vmul.f32 %v3963_v45, %v2059_v7  ;;  %v1972_v62 = vadd.f32 %v1971_v55, %v1883_v43  ;;  %v3232_v7 = vld [vmem:[%s3510_s15 + $0x338] sm:$0xf0]  ;;  %v2867_v43 = vld [vmem:[%s3510_s15 + $0x33c] sm:$0xf0]  ;;  %v2873_v55 = vld [vmem:[%s3510_s15 + $0x328] sm:$0xf] }
 0x1c4   : > { %v2870_v37 = vor.u32 %v3229_v47, %v2867_v43  ;;  %v2275_v47 = vld [vmem:[%s4271_s4 + $0x40] sm:$0xff] }
 0x1c5   : > { %v2166_v63 = vadd.f32 %v3977_v11, %v2130_v4  ;;  %v3233_v4 = vld [vmem:[%s3510_s15 + $0x340] sm:$0xf0] }
 0x1c6   : > { %v1813_v25 = vpop.f32.mrf.mxu3  ;;  %v2874_v6 = vor.u32 %v3233_v4, %v2873_v55 }
 0x1c7   : > { %v2198_v36 = vmax.f32 %v2166_v63, 0.0  ;;  %v4070_v5 = vadd.f32 %v1813_v25, %v3879_v18 }
 0x1c8   : > { %v2060_v22 = vpop.f32.mrf.mxu2  ;;  %v1885_v39 = vpop.f32.mrf.mxu0 }
 0x1c9   : > { %v2229_v16 = vadd.f32 %v2228_v46, %v2198_v36  ;;  %v2061_v52 = vadd.f32 %v2060_v22, %v1972_v62  ;;  %v1886_v29 = vadd.f32 %v1885_v39, %v3989_v35  ;;  %v1974_v30 = vpop.f32.mrf.mxu1  ;;  %v2865_v46 = vld [vmem:[%s3510_s15 + $0x320] sm:$0xf]  ;;  %v2276_v36 = vld [vmem:[%s4271_s4 + $0x48] sm:$0xff] }
 0x1ca   : > { %v2866_v3 = vor.u32 %v3232_v7, %v2865_v46  ;;  %2290 = vmatpush.msra.mxu3 %v2276_v36 }
 0x1cb   : > { %v2131_v31 = vmul.f32 %v3963_v45, %v2061_v52  ;;  %v1975_v32 = vadd.f32 %v1974_v30, %v1886_v29  ;;  %1924 = vmatmul.bf16.gmra.mxu0 %v2838_v21 }
 0x1cc   : > { %2013 = vmatmul.bf16.gmra.mxu1 %v2842_v58  ;;  %2291 = vmatpush.msra.mxu3 %v2275_v47 }
 0x1cd   : > { %v2167_v18 = vadd.f32 %v3977_v11, %v2131_v31  ;;  %2102 = vmatmul.bf16.gmra.mxu2 %v2846_v38 }
 0x1ce   : > { %v1816_v33 = vpop.f32.mrf.mxu3 }
 0x1cf   : > { %v2199_v54 = vmax.f32 %v2167_v18, 0.0  ;;  %v4079_v35 = vadd.f32 %v1816_v33, %v3884_v61  ;;  %v2893_v33 = vld [vmem:[%s3510_s15 + $0x358] sm:$0xf] }
 0x1d0   : > { %v2063_v12 = vpop.f32.mrf.mxu2  ;;  %v1887_v8 = vpop.f32.mrf.mxu0 }
 0x1d1   : > { %v2230_v28 = vadd.f32 %v2229_v16, %v2199_v54  ;;  %v2064_v17 = vadd.f32 %v2063_v12, %v1975_v32  ;;  %v1888_v15 = vadd.f32 %v1887_v8, %v4003_v19  ;;  %v1976_v60 = vpop.f32.mrf.mxu1  ;;  %v3239_v12 = vld [vmem:[%s3510_s15 + $0x370] sm:$0xf0]  ;;  %v2901_v8 = vld [vmem:[%s3510_s15 + $0x360] sm:$0xf] }
 0x1d3   : > { %v2132_v9 = vmul.f32 %v3963_v45, %v2064_v17  ;;  %v1977_v59 = vadd.f32 %v1976_v60, %v1888_v15  ;;  %v2895_v17 = vld [vmem:[%s3510_s15 + $0x374] sm:$0xf0]  ;;  %v3240_v15 = vld [vmem:[%s3510_s15 + $0x378] sm:$0xf0] }
 0x1d5   : > { %v2168_v42 = vadd.f32 %v3977_v11, %v2132_v9  ;;  %v2894_v9 = vor.u32 %v3239_v12, %v2893_v33 }
 0x1d6   : > { %v1818_v62 = vpop.f32.mrf.mxu3 }
 0x1d7   : > { %v2200_v61 = vmax.f32 %v2168_v42, 0.0  ;;  %v4091_v63 = vadd.f32 %v1818_v62, %v3897_v14 }
 0x1d8   : > { %v2065_v1 = vpop.f32.mrf.mxu2  ;;  %v1890_v48 = vpop.f32.mrf.mxu0 }
 0x1d9   : > { %v2231_v19 = vadd.f32 %v2230_v28, %v2200_v61  ;;  %v2066_v26 = vadd.f32 %v2065_v1, %v1977_v59  ;;  %v1891_v25 = vadd.f32 %v1890_v48, %v4012_v13  ;;  %v1979_v22 = vpop.f32.mrf.mxu1  ;;  %v3236_v28 = vld [vmem:[%s3510_s15 + $0x35c] sm:$0xf]  ;;  %s3353_s15 = smov 96  }
 0x1da   : > { %v2898_v7 = vor.u32 %v3236_v28, %v2895_v17 }
 0x1db   : > { %v2133_v21 = vmul.f32 %v3963_v45, %v2066_v26  ;;  %v1980_v16 = vadd.f32 %v1979_v22, %v1891_v25  ;;  %1929 = vmatmul.bf16.gmra.mxu0 %v2866_v3 }
 0x1dc   : > { %2018 = vmatmul.bf16.gmra.mxu1 %v2870_v37 }
 0x1dd   : > { %v2169_v14 = vadd.f32 %v3977_v11, %v2133_v21  ;;  %2107 = vmatmul.bf16.gmra.mxu2 %v2874_v6 }
 0x1de   : > { %v1821_v39 = vpop.f32.mrf.mxu3 }
 0x1df   : > { %v2201_v52 = vmax.f32 %v2169_v14, 0.0  ;;  %v4100_v13 = vadd.f32 %v1821_v39, %v3902_v20  ;;  %v2274_v39 = vld [vmem:[%s4271_s4 + $0x38] sm:$0xff] }
 0x1e0   : > { %v2068_v58 = vpop.f32.mrf.mxu2  ;;  %v1892_v29 = vpop.f32.mrf.mxu0  ;;  %2292 = vmatpush.msra.mxu3 %v2274_v39 }
 0x1e1   : > { %v2232_v38 = vadd.f32 %v2231_v19, %v2201_v52  ;;  %v2069_v51 = vadd.f32 %v2068_v58, %v1980_v16  ;;  %v1893_v30 = vadd.f32 %v1892_v29, %v4026_v34  ;;  %v1981_v31 = vpop.f32.mrf.mxu1  ;;  %v2902_v34 = vor.u32 %v3240_v15, %v2901_v8 }
 0x1e3   : > { %v2134_v32 = vmul.f32 %v3963_v45, %v2069_v51  ;;  %v1982_v18 = vadd.f32 %v1981_v31, %v1893_v30 }
 0x1e5   : > { %v2170_v54 = vadd.f32 %v3977_v11, %v2134_v32 }
 0x1e7   : > { %v2202_v20 = vmax.f32 %v2170_v54, 0.0 }
 0x1e8   : > { %v2070_v60 = vpop.f32.mrf.mxu2  ;;  %v1895_v46 = vpop.f32.mrf.mxu0 }
 0x1e9   : > { %v2233_v59 = vadd.f32 %v2232_v38, %v2202_v20  ;;  %v2071_v42 = vadd.f32 %v2070_v60, %v1982_v18  ;;  %v1896_v43 = vadd.f32 %v1895_v46, %v4035_v56  ;;  %v1984_v55 = vpop.f32.mrf.mxu1 }
 0x1eb   : > { %v2135_v4 = vmul.f32 %v3963_v45, %v2071_v42  ;;  %v1985_v61 = vadd.f32 %v1984_v55, %v1896_v43  ;;  %1934 = vmatmul.bf16.gmra.mxu0 %v2894_v9  ;;  %v1823_v42 = vpop.f32.mrf.mxu3 }
 0x1ec   : > { %2023 = vmatmul.bf16.gmra.mxu1 %v2898_v7 }
 0x1ed   : > { %v2171_v62 = vadd.f32 %v3977_v11, %v2135_v4  ;;  %2112 = vmatmul.bf16.gmra.mxu2 %v2902_v34 }
 0x1ef   : > { %v2203_v1 = vmax.f32 %v2171_v62, 0.0 }
 0x1f0   : > { %v2073_v3 = vpop.f32.mrf.mxu2  ;;  %v1897_v48 = vpop.f32.mrf.mxu0 }
 0x1f1   : > { %v2234_v19 = vadd.f32 %v2233_v59, %v2203_v1  ;;  %v2074_v26 = vadd.f32 %v2073_v3, %v1985_v61  ;;  %v1898_v37 = vadd.f32 %v1897_v48, %v4049_v53  ;;  %v1986_v6 = vpop.f32.mrf.mxu1  ;;  %v2273_v59 = vld [vmem:[%s4271_s4 + $0x30] sm:$0xff] }
 0x1f2   : > { %2293 = vmatpush.msra.mxu3 %v2273_v59 }
 0x1f3   : > { %v2136_v56 = vmul.f32 %v3963_v45, %v2074_v26  ;;  %v1987_v36 = vadd.f32 %v1986_v6, %v1898_v37  ;;  %v1826_v26 = vpop.f32.mrf.mxu3 }
 0x1f5   : > { %v2172_v25 = vadd.f32 %v3977_v11, %v2136_v56 }
 0x1f7   : > { %v2204_v22 = vmax.f32 %v2172_v25, 0.0 }
 0x1f8   : > { %v2075_v21 = vpop.f32.mrf.mxu2  ;;  %v1900_v52 = vpop.f32.mrf.mxu0 }
 0x1f9   : > { %v2235_v16 = vadd.f32 %v2234_v19, %v2204_v22  ;;  %v2076_v14 = vadd.f32 %v2075_v21, %v1987_v36  ;;  %v1901_v58 = vadd.f32 %v1900_v52, %v4059_v40  ;;  %v1989_v38 = vpop.f32.mrf.mxu1  ;;  %v2272_v22 = vld [vmem:[%s4271_s4 + $0x28] sm:$0xff] }
 0x1fa   : > { %2294 = vmatpush.msra.mxu3 %v2272_v22 }
 0x1fb   : > { %v2137_v53 = vmul.f32 %v3963_v45, %v2076_v14  ;;  %v1990_v51 = vadd.f32 %v1989_v38, %v1901_v58  ;;  %v1828_v39 = vpop.f32.mrf.mxu3 }
 0x1fd   : > { %v2173_v29 = vadd.f32 %v3977_v11, %v2137_v53  ;;  %v1824_v53 = vadd.f32 %v1823_v42, %v3915_v0  ;;  %v2271_v0 = vld [vmem:[%s4271_s4 + $0x20] sm:$0xff] }
 0x1fe   : > { %2295 = vmatpush.msra.mxu3 %v2271_v0 }
 0x1ff   : > { %v2205_v30 = vmax.f32 %v2173_v29, 0.0 }
 0x200   : > { %v2078_v31 = vpop.f32.mrf.mxu2  ;;  %v1902_v54 = vpop.f32.mrf.mxu0 }
 0x201   : > { %v2236_v32 = vadd.f32 %v2235_v16, %v2205_v30  ;;  %v2079_v18 = vadd.f32 %v2078_v31, %v1990_v51  ;;  %v1903_v33 = vadd.f32 %v1902_v54, %v4070_v5  ;;  %v1991_v12 = vpop.f32.mrf.mxu1 }
 0x203   : > { %v2138_v28 = vmul.f32 %v3963_v45, %v2079_v18  ;;  %v1992_v17 = vadd.f32 %v1991_v12, %v1903_v33  ;;  %v1831_v12 = vpop.f32.mrf.mxu3 }
 0x205   : > { %v2174_v40 = vadd.f32 %v3977_v11, %v2138_v28 }
 0x207   : > { %v2206_v8 = vmax.f32 %v2174_v40, 0.0 }
 0x208   : > { %v2080_v15 = vpop.f32.mrf.mxu2  ;;  %v1905_v9 = vpop.f32.mrf.mxu0 }
 0x209   : > { %v2237_v20 = vadd.f32 %v2236_v32, %v2206_v8  ;;  %v2081_v60 = vadd.f32 %v2080_v15, %v1992_v17  ;;  %v1906_v46 = vadd.f32 %v1905_v9, %v4079_v35  ;;  %v1994_v7 = vpop.f32.mrf.mxu1  ;;  %v1827_v17 = vadd.f32 %v1826_v26, %v3920_v2 }
 0x20a   : > { %v1832_v26 = vadd.f32 %v1831_v12, %v3938_v57 }
 0x20b   : > { %v2139_v5 = vmul.f32 %v3963_v45, %v2081_v60  ;;  %v1995_v34 = vadd.f32 %v1994_v7, %v1906_v46 }
 0x20d   : > { %v2175_v47 = vadd.f32 %v3977_v11, %v2139_v5  ;;  %v1829_v5 = vadd.f32 %v1828_v39, %v3933_v41  ;;  %v2270_v41 = vld [vmem:[%s4271_s4 + $0x18] sm:$0xff] }
 0x20e   : > { %2296 = vmatpush.msra.mxu3 %v2270_v41 }
 0x20f   : > { %v2207_v43 = vmax.f32 %v2175_v47, 0.0 }
 0x210   : > { %v2083_v55 = vpop.f32.mrf.mxu2  ;;  %v1907_v62 = vpop.f32.mrf.mxu0 }
 0x211   : > { %v2238_v4 = vadd.f32 %v2237_v20, %v2207_v43  ;;  %v2084_v61 = vadd.f32 %v2083_v55, %v1995_v34  ;;  %v1908_v1 = vadd.f32 %v1907_v62, %v4091_v63  ;;  %v1996_v3 = vpop.f32.mrf.mxu1  ;;  %v1833_v43 = vpop.f32.mrf.mxu3 }
 0x212   : > { %v1834_v57 = vadd.f32 %v1833_v43, %v3951_v27  ;;  %v2269_v27 = vld [vmem:[%s4271_s4 + $0x10] sm:$0xff] }
 0x213   : > { %v2140_v19 = vmul.f32 %v3963_v45, %v2084_v61  ;;  %v1997_v48 = vadd.f32 %v1996_v3, %v1908_v1  ;;  %2297 = vmatpush.msra.mxu3 %v2269_v27 }
 0x215   : > { %v2176_v35 = vadd.f32 %v3977_v11, %v2140_v19 }
 0x217   : > { %v2208_v37 = vmax.f32 %v2176_v35, 0.0 }
 0x218   : > { %v2085_v6 = vpop.f32.mrf.mxu2  ;;  %v1910_v25 = vpop.f32.mrf.mxu0 }
 0x219   : > { %v2239_v56 = vadd.f32 %v2238_v4, %v2208_v37  ;;  %v2086_v36 = vadd.f32 %v2085_v6, %v1997_v48  ;;  %v1911_v21 = vadd.f32 %v1910_v25, %v4100_v13  ;;  %v1999_v16 = vpop.f32.mrf.mxu1  ;;  %v1836_v25 = vpop.f32.mrf.mxu3 }
 0x21b   : > { %v2141_v63 = vmul.f32 %v3963_v45, %v2086_v36  ;;  %v2000_v14 = vadd.f32 %v1999_v16, %v1911_v21 }
 0x21d   : > { %v2177_v52 = vadd.f32 %v3977_v11, %v2141_v63 }
 0x21f   : > { %v2209_v58 = vmax.f32 %v2177_v52, 0.0 }
 0x220   : > { %v2088_v38 = vpop.f32.mrf.mxu2  ;;  %v1912_v30 = vpop.f32.mrf.mxu0 }
 0x221   : > { %v2240_v51 = vadd.f32 %v2239_v56, %v2209_v58  ;;  %v2089_v29 = vadd.f32 %v2088_v38, %v2000_v14  ;;  %v2001_v31 = vpop.f32.mrf.mxu1  ;;  %v1913_v18 = vadd.f32 %v1912_v30, %v1824_v53 }
 0x223   : > { %v2142_v32 = vmul.f32 %v3963_v45, %v2089_v29  ;;  %v2002_v33 = vadd.f32 %v2001_v31, %v1913_v18  ;;  %v1838_v29 = vpop.f32.mrf.mxu3  ;;  %v1837_v18 = vadd.f32 %v1836_v25, %v3828_v50 }
 0x224   : > { %v1839_v50 = vadd.f32 %v1838_v29, %v3841_v23  ;;  %v2267_v23 = vld [vmem:[%s4271_s4] sm:$0xff] }
 0x225   : > { %v2178_v13 = vadd.f32 %v3977_v11, %v2142_v32  ;;  %v2312_v29 = vld [vmem:[%s4273_s6 + $0x40] sm:$0xff] }
 0x227   : > { %v2210_v54 = vmax.f32 %v2178_v13, 0.0 }
 0x228   : > { %v2090_v28 = vpop.f32.mrf.mxu2  ;;  %v1915_v15 = vpop.f32.mrf.mxu0 }
 0x229   : > { %v2241_v40 = vadd.f32 %v2240_v51, %v2210_v54  ;;  %v2091_v8 = vadd.f32 %v2090_v28, %v2002_v33  ;;  %v2004_v20 = vpop.f32.mrf.mxu1  ;;  %v1916_v9 = vadd.f32 %v1915_v15, %v1827_v17 }
 0x22b   : > { %v2143_v60 = vmul.f32 %v3963_v45, %v2091_v8  ;;  %v2005_v46 = vadd.f32 %v2004_v20, %v1916_v9  ;;  %v1841_v0 = vpop.f32.mrf.mxu3 }
 0x22d   : > { %v2179_v59 = vadd.f32 %v3977_v11, %v2143_v60 }
 0x22f   : > { %v2211_v42 = vmax.f32 %v2179_v59, 0.0 }
 0x230   : > { %v2093_v7 = vpop.f32.mrf.mxu2  ;;  %v1917_v47 = vpop.f32.mrf.mxu0 }
 0x231   : > { %v2242_v2 = vadd.f32 %v2241_v40, %v2211_v42  ;;  %v2094_v34 = vadd.f32 %v2093_v7, %v2005_v46  ;;  %v2006_v55 = vpop.f32.mrf.mxu1  ;;  %v1918_v61 = vadd.f32 %v1917_v47, %v1829_v5 }
 0x233   : > { %v2144_v4 = vmul.f32 %v3963_v45, %v2094_v34  ;;  %v2007_v3 = vadd.f32 %v2006_v55, %v1918_v61  ;;  %v1842_v55 = vadd.f32 %v1841_v0, %v3846_v49 }
 0x235   : > { %v2180_v62 = vadd.f32 %v3977_v11, %v2144_v4 }
 0x237   : > { %v2212_v1 = vmax.f32 %v2180_v62, 0.0 }
 0x238   : > { %v2095_v19 = vpop.f32.mrf.mxu2  ;;  %v1920_v37 = vpop.f32.mrf.mxu0 }
 0x239   : > { %v2243_v48 = vadd.f32 %v2242_v2, %v2212_v1  ;;  %v2096_v35 = vadd.f32 %v2095_v19, %v2007_v3  ;;  %v2009_v6 = vpop.f32.mrf.mxu1  ;;  %v1921_v36 = vadd.f32 %v1920_v37, %v1832_v26  ;;  %v2268_v2 = vld [vmem:[%s4271_s4 + $0x8] sm:$0xff]  ;;  %v2319_v1 = vld [vmem:[%s4273_s6 + $0x78] sm:$0xff]  ;;  %v1843_v3 = vpop.f32.mrf.mxu3 }
 0x23a   : > { %2298 = vmatpush.msra.mxu3 %v2268_v2  ;;  %v2317_v37 = vld [vmem:[%s4273_s6 + $0x68] sm:$0xff]  ;;  %v1844_v25 = vadd.f32 %v1843_v3, %v3859_v10  ;;  %v3352_v2 = vmov 256.0  }
 0x23b   : > { %v2145_v56 = vmul.f32 %v3963_v45, %v2096_v35  ;;  %v2010_v16 = vadd.f32 %v2009_v6, %v1921_v36  ;;  %v2318_v35 = vld [vmem:[%s4273_s6 + $0x70] sm:$0xff]  ;;  %3335 = vrcp.f32 %v3352_v2 }
 0x23c   : > { %2299 = vmatpush.msra.mxu3 %v2267_v23 }
 0x23d   : > { %v2181_v22 = vadd.f32 %v3977_v11, %v2145_v56  ;;  %v2316_v56 = vld [vmem:[%s4273_s6 + $0x60] sm:$0xff] }
 0x23e   : > { %2321 = vmatpush.msrb.mxu3 %v2319_v1  ;;  %v3343_v1 = vld [vmem:[%s4269_s2] ss:$0 sm:$0xff] }
 0x23f   : > { %v2213_v21 = vmax.f32 %v2181_v22, 0.0 }
 0x240   : > { %v2098_v63 = vpop.f32.mrf.mxu2  ;;  %v1922_v39 = vpop.f32.mrf.mxu0  ;;  %2322 = vmatpush.msrb.mxu3 %v2318_v35 }
 0x241   : > { %v2244_v14 = vadd.f32 %v2243_v48, %v2213_v21  ;;  %v2099_v52 = vadd.f32 %v2098_v63, %v2010_v16  ;;  %v2011_v58 = vpop.f32.mrf.mxu1  ;;  %v1923_v53 = vadd.f32 %v1922_v39, %v1834_v57  ;;  %v2315_v63 = vld [vmem:[%s4273_s6 + $0x58] sm:$0xff]  ;;  %v2314_v39 = vld [vmem:[%s4273_s6 + $0x50] sm:$0xff] }
 0x242   : > { %2323 = vmatpush.msrb.mxu3 %v2317_v37 }
 0x243   : > { %v2146_v38 = vmul.f32 %v3963_v45, %v2099_v52  ;;  %v2012_v31 = vadd.f32 %v2011_v58, %v1923_v53  ;;  %v1846_v58 = vpop.f32.mrf.mxu3 }
 0x244   : > { %2324 = vmatpush.msrb.mxu3 %v2316_v56 }
 0x245   : > { %v2182_v51 = vadd.f32 %v3977_v11, %v2146_v38  ;;  %v2313_v38 = vld [vmem:[%s4273_s6 + $0x48] sm:$0xff] }
 0x246   : > { %2325 = vmatpush.msrb.mxu3 %v2315_v63 }
 0x247   : > { %v2214_v30 = vmax.f32 %v2182_v51, 0.0 }
 0x248   : > { %v2100_v32 = vpop.f32.mrf.mxu2  ;;  %v1925_v33 = vpop.f32.mrf.mxu0  ;;  %2326 = vmatpush.msrb.mxu3 %v2314_v39 }
 0x249   : > { %v2245_v13 = vadd.f32 %v2244_v14, %v2214_v30  ;;  %v2101_v54 = vadd.f32 %v2100_v32, %v2012_v31  ;;  %v2014_v12 = vpop.f32.mrf.mxu1  ;;  %v1926_v17 = vadd.f32 %v1925_v33, %v1837_v18  ;;  %v1847_v31 = vadd.f32 %v1846_v58, %v3864_v24  ;;  %v2309_v24 = vld [vmem:[%s4273_s6 + $0x28] sm:$0xff] }
 0x24a   : > { %2327 = vmatpush.msrb.mxu3 %v2313_v38 }
 0x24b   : > { %v2147_v28 = vmul.f32 %v3963_v45, %v2101_v54  ;;  %v2015_v15 = vadd.f32 %v2014_v12, %v1926_v17  ;;  %v2311_v54 = vld [vmem:[%s4273_s6 + $0x38] sm:$0xff]  ;;  %v2310_v12 = vld [vmem:[%s4273_s6 + $0x30] sm:$0xff] }
 0x24c   : > { %2328 = vmatpush.msrb.mxu3 %v2312_v29 }
 0x24d   : > { %v2183_v40 = vadd.f32 %v3977_v11, %v2147_v28 }
 0x24e   : > { %2329 = vmatpush.msrb.mxu3 %v2311_v54 }
 0x24f   : > { %v2215_v8 = vmax.f32 %v2183_v40, 0.0  ;;  %v2308_v40 = vld [vmem:[%s4273_s6 + $0x20] sm:$0xff] }
 0x250   : > { %v2103_v20 = vpop.f32.mrf.mxu2  ;;  %v1927_v59 = vpop.f32.mrf.mxu0  ;;  %2330 = vmatpush.msrb.mxu3 %v2310_v12 }
 0x251   : > { %v2246_v60 = vadd.f32 %v2245_v13, %v2215_v8  ;;  %v2104_v9 = vadd.f32 %v2103_v20, %v2015_v15  ;;  %v2016_v42 = vpop.f32.mrf.mxu1  ;;  %v1928_v7 = vadd.f32 %v1927_v59, %v1839_v50  ;;  %v1848_v8 = vpop.f32.mrf.mxu3 }
 0x252   : > { %2331 = vmatpush.msrb.mxu3 %v2309_v24  ;;  %v1849_v50 = vadd.f32 %v1848_v8, %v3877_v44  ;;  %v2305_v44 = vld [vmem:[%s4273_s6 + $0x8] sm:$0xff] }
 0x253   : > { %v2148_v46 = vmul.f32 %v3963_v45, %v2104_v9  ;;  %v2017_v47 = vadd.f32 %v2016_v42, %v1928_v7  ;;  %v2307_v42 = vld [vmem:[%s4273_s6 + $0x18] sm:$0xff] }
 0x254   : > { %2332 = vmatpush.msrb.mxu3 %v2308_v40 }
 0x255   : > { %v2184_v5 = vadd.f32 %v3977_v11, %v2148_v46  ;;  %v2306_v46 = vld [vmem:[%s4273_s6 + $0x10] sm:$0xff] }
 0x256   : > { %2333 = vmatpush.msrb.mxu3 %v2307_v42 }
 0x257   : > { %v2216_v34 = vmax.f32 %v2184_v5, 0.0 }
 0x258   : > { %v2105_v43 = vpop.f32.mrf.mxu2  ;;  %v1930_v62 = vpop.f32.mrf.mxu0  ;;  %2334 = vmatpush.msrb.mxu3 %v2306_v46 }
 0x259   : > { %v2247_v4 = vadd.f32 %v2246_v60, %v2216_v34  ;;  %v2106_v61 = vadd.f32 %v2105_v43, %v2017_v47  ;;  %v2019_v19 = vpop.f32.mrf.mxu1  ;;  %v1931_v48 = vadd.f32 %v1930_v62, %v1842_v55  ;;  %v2304_v47 = vld [vmem:[%s4273_s6] sm:$0xff] }
 0x25a   : > { %2335 = vmatpush.msrb.mxu3 %v2305_v44 }
 0x25b   : > { %v2149_v26 = vmul.f32 %v3963_v45, %v2106_v61  ;;  %v2020_v6 = vadd.f32 %v2019_v19, %v1931_v48 }
 0x25c   : > { %2336 = vmatpush.msrb.mxu3 %v2304_v47 }
 0x25d   : > { %v2185_v49 = vadd.f32 %v3977_v11, %v2149_v26 }
 0x25f   : > { %v2217_v41 = vmax.f32 %v2185_v49, 0.0 }
 0x260   : > { %v2108_v36 = vpop.f32.mrf.mxu2  ;;  %v1932_v16 = vpop.f32.mrf.mxu0 }
 0x261   : > { %v2248_v22 = vadd.f32 %v2247_v4, %v2217_v41  ;;  %v2109_v21 = vadd.f32 %v2108_v36, %v2020_v6  ;;  %v2021_v57 = vpop.f32.mrf.mxu1  ;;  %v1933_v52 = vadd.f32 %v1932_v16, %v1844_v25 }
 0x263   : > { %v2150_v14 = vmul.f32 %v3963_v45, %v2109_v21  ;;  %v2022_v51 = vadd.f32 %v2021_v57, %v1933_v52  ;;  %v2320_v52 = vld [vmem:[%s4274_s7] sm:$0x1] }
 0x265   : > { %v2186_v10 = vadd.f32 %v3977_v11, %v2150_v14 }
 0x267   : > { %v2218_v53 = vmax.f32 %v2186_v10, 0.0 }
 0x268   : > { %v2110_v30 = vpop.f32.mrf.mxu2  ;;  %v1935_v13 = vpop.f32.mrf.mxu0 }
 0x269   : > { %v2249_v32 = vadd.f32 %v2248_v22, %v2218_v53  ;;  %v2111_v18 = vadd.f32 %v2110_v30, %v2022_v51  ;;  %v1936_v27 = vadd.f32 %v1935_v13, %v1847_v31  ;;  %v2024_v28 = vpop.f32.mrf.mxu1 }
 0x26b   : > { %v2151_v33 = vmul.f32 %v3963_v45, %v2111_v18  ;;  %v2025_v0 = vadd.f32 %v2024_v28, %v1936_v27 }
 0x26d   : > { %v2187_v17 = vadd.f32 %v3977_v11, %v2151_v33 }
 0x26f   : > { %v2219_v15 = vmax.f32 %v2187_v17, 0.0 }
 0x270   : > { %v2113_v20 = vpop.f32.mrf.mxu2  ;;  %v1937_v59 = vpop.f32.mrf.mxu0 }
 0x271   : > { %v2250_v60 = vadd.f32 %v2249_v32, %v2219_v15  ;;  %v2114_v9 = vadd.f32 %v2113_v20, %v2025_v0  ;;  %v1938_v5 = vadd.f32 %v1937_v59, %v1849_v50  ;;  %v2026_v43 = vpop.f32.mrf.mxu1 }
 0x273   : > { %v2152_v7 = vmul.f32 %v3963_v45, %v2114_v9  ;;  %v2027_v55 = vadd.f32 %v2026_v43, %v1938_v5  ;;  %v3336_v45 = vpop.eup %3335 }
 0x274   : > { %v2260_v19 = vmul.f32 256.0, %v3336_v45  ;;  %vm2264_vm0 = vweird.f32 %v3336_v45 }
 0x275   : > { %v2188_v34 = vadd.f32 %v3977_v11, %v2152_v7 }
 0x276   : > { %v2261_v35 = vsub.f32 1.0, %v2260_v19 }
 0x277   : > { %v2220_v23 = vmax.f32 %v2188_v34, 0.0 }
 0x278   : > { %v2115_v4 = vpop.f32.mrf.mxu2  ;;  %v2262_v41 = vmul.f32 %v3336_v45, %v2261_v35 }
 0x279   : > { %v2251_v61 = vadd.f32 %v2250_v60, %v2220_v23  ;;  %v2116_v62 = vadd.f32 %v2115_v4, %v2027_v55 }
 0x27a   : > { %v2263_v36 = vadd.f32 %v3336_v45, %v2262_v41 }
 0x27b   : > { %v2153_v3 = vmul.f32 %v3343_v1, %v2116_v62 }
 0x27c   : > { %v2265_v21 = vsel %vm2264_vm0, %v3336_v45, %v2263_v36 }
 0x27d   : > { %v2189_v26 = vadd.f32 %v3977_v11, %v2153_v3  ;;  %v2283_v11 = vld [vmem:[%s4272_s5] sm:$0x1] }
 0x27f   : > { %v2221_v48 = vmax.f32 %v2189_v26, 0.0 }
 0x281   : > { %v2252_v49 = vadd.f32 %v2251_v61, %v2221_v48 }
 0x283   : > { %v2253_v37 = vrot.slane %v2252_v49, 4 }
 0x285   : > { %v2254_v6 = vadd.f32 %v2253_v37, %v2252_v49 }
 0x287   : > { %v2255_v56 = vrot.slane %v2254_v6, 2 }
 0x289   : > { %v2256_v25 = vadd.f32 %v2255_v56, %v2254_v6 }
 0x28b   : > { %v2257_v22 = vrot.slane %v2256_v25, 1 }
 0x28d   : > { %v2258_v16 = vadd.f32 %v2257_v22, %v2256_v25 }
 0x28f   : > { %v2266_v63 = vmul.f32 %v2265_v21, %v2258_v16 }
 0x291   : > { %2300 = vmatmul.f32.vlgmr.msra.gmra.mxu3 %v2266_v63 }
 0x299   : > { %2337 = vmatmul.f32.vlgmr.msrb.gmra.mxu3 %v2266_v63 }
 0x314   : > { %v2301_v57 = vpop.f32.mrf.mxu3 }
 0x315   : > { %v2302_v14 = vadd.f32 %v2301_v57, %v2283_v11 }
 0x317   : > { %2375 = vst.msk [vmem:[%s342_s17] sm:$0x1] %vm2373_vm1, %v2302_v14 }
 0x31c   : > { %v2338_v39 = vpop.f32.mrf.mxu3 }
 0x31d   : > { %v2339_v58 = vadd.f32 %v2338_v39, %v2320_v52 }
 0x31f   : > { %2342 = vrot.lane.b32.xlu0 %v2339_v58, %s3353_s15 }
 0x391   : > { %v2343_v10 = vpop.permute.xlu0 %2342 }
 0x392   : > { %v2345_v38 = vmax.f32 %v2339_v58, %v2343_v10 }
 0x394   : > { %2350 = vrot.lane.b32.xlu0 %v2345_v38, %s3354_s20  ;;  %v2346_v31 = vsub.f32 %v2339_v58, %v2345_v38 }
 0x396   : > { %v2347_v32 = vmul.f32 1.442695, %v2346_v31 }
 0x406   : > { %v2351_v53 = vpop.permute.xlu0 %2350 }
 0x407   : > { %v2353_v51 = vsub.f32 %v2339_v58, %v2351_v53 }
 0x409   : > { %v2354_v29 = vmul.f32 1.442695, %v2353_v51 }
 0x40b   : > { %3337 = vpow2.f32 %v2354_v29 }
 0x40c   : > { %3339 = vpow2.f32 %v2347_v32 }
 0x411   : > { %v3338_v30 = vpop.eup %3337 }
 0x412   : > { %2357 = vrot.lane.b32.xlu1 %v3338_v30, %s3353_s15  ;;  %v3340_v18 = vpop.eup %3339 }
 0x484   : > { %v2358_v13 = vpop.permute.xlu1 %2357 }
 0x485   : > { %v2360_v54 = vadd.f32 %v3340_v18, %v2358_v13 }
 0x487   : > { %3341 = vrcp.f32 %v2360_v54 }
 0x48d   : > { %v3342_v33 = vpop.eup %3341 }
 0x48e   : > { %2364 = vrot.lane.b32.xlu1 %v3342_v33, %s3354_s20  ;;  %v2362_v27 = vmul.f32 %v3342_v33, %v3340_v18 }
 0x500   : > { %v2365_v12 = vpop.permute.xlu1 %2364 }
 0x501   : > { %v2367_v28 = vmul.f32 %v3338_v30, %v2365_v12 }
 0x503   : > { %2369 = vrot.lane.b32.xlu2 %v2367_v28, %s3353_s15 }
 0x55d   : > { %v2370_v17 = vpop.permute.xlu2 %2369 }
 0x55e   : > { %v2372_v24 = vadd.f32 %v2370_v17, %v2362_v27 }
 0x560   : > { %2374 = vst.msk [vmem:[%s339_s23] sm:$0x1] %vm2373_vm1, %v2372_v24 }
 0x561 PF: > { %s20_s30 = sadd.s32 1, %s3350_s30  }
 0x562   : > { %p17_p5 = scmp.ge.s32.totalorder %s20_s30, 4  }
 0x564   :  { %19 = sbr.rel (!%p17_p5) target bundleno = 1 (0x1), region = 94 }

</bundles_post_ra>
